<compile_context>
chip_gen: v5e
topology: v5e:2x2
jax: 0.10.0
libtpu: 0.0.40
codegen_flags: <defaults>
</compile_context>

<pallas_src>
import functools

import jax
import jax.numpy as jnp
from jax import lax
from jax.experimental import pallas as pl
from jax.experimental.pallas import tpu as pltpu


def _lstm_textgen_kernel(ids_ref,
                         wih0_ref, whh0_ref, b0_ref,
                         wih1_ref, whh1_ref, b1_ref,
                         wfc_ref, bfc_ref,
                         out_ref,
                         *, T, B_pad, H, V):
    """Full forward: 2-layer LSTM over T steps + fc + /0.5, one kernel invocation."""

    # ---- layer-0 input projection, batched over all (t, b), off the serial path.
    # one_hot(ids) @ W_ih0^T is a row select of wih0T; doing it once as a single
    # (T*B_pad, V) x (V, 4H) MXU op removes it from the per-step recurrence.
    ids = ids_ref[...]                                              # (T*B_pad, 1) i32
    col = lax.broadcasted_iota(jnp.int32, (T * B_pad, V), 1)
    onehot = (ids == col).astype(jnp.float32)                       # (T*B_pad, V)
    xw_all = jnp.dot(onehot, wih0_ref[...],
                     preferred_element_type=jnp.float32) + b0_ref[...]  # (T*B_pad, 4H)

    # ---- hoist loop-invariant weight loads / broadcasts out of the unrolled loop.
    whh0 = whh0_ref[...]                                            # (H, 4H)
    wih1 = wih1_ref[...]                                            # (H, 4H)
    whh1 = whh1_ref[...]                                            # (H, 4H)
    b1b = jnp.broadcast_to(b1_ref[...], (B_pad, 4 * H))             # (B_pad, 4H)

    def gates_to_state(gates, c):
        # PyTorch gate order: [i | f | g | o], each of width H.
        # Apply sigmoid / tanh once to the whole (B_pad, 4H) tile (3 EUP pushes per
        # cell including tanh(c_new), instead of 5), then slice the gates out.
        sig_all = jax.nn.sigmoid(gates)
        tanh_all = jnp.tanh(gates)
        i = sig_all[:, 0 * H:1 * H]
        f = sig_all[:, 1 * H:2 * H]
        g = tanh_all[:, 2 * H:3 * H]
        o = sig_all[:, 3 * H:4 * H]
        c_new = f * c + i * g
        h_new = o * jnp.tanh(c_new)
        return h_new, c_new

    zeros = jnp.zeros((B_pad, H), jnp.float32)                      # init_hidden
    h0, c0, h1, c1 = zeros, zeros, zeros, zeros

    # Static unroll over the (short) sequence; the recurrence is inherently serial.
    # h1 history stays in vregs (T * 1 vreg = cheap) -> no memory effects in the loop.
    h1_hist = []
    for t in range(T):
        # layer 0: only h0 @ W_hh0 remains on the serial path.
        g0 = xw_all[t * B_pad:(t + 1) * B_pad, :] + jnp.dot(
            h0, whh0, preferred_element_type=jnp.float32)
        h0, c0 = gates_to_state(g0, c0)

        # layer 1: two independent MXU pushes (no lane concat on the critical path).
        g1 = (jnp.dot(h0, wih1, preferred_element_type=jnp.float32)
              + jnp.dot(h1, whh1, preferred_element_type=jnp.float32)
              + b1b)
        h1, c1 = gates_to_state(g1, c1)

        h1_hist.append(h1)

    # t-major stacking of the layer-1 hidden states: (T*B_pad, H).
    hs = jnp.concatenate(h1_hist, axis=0)

    # ---- fc + temperature (probs / 0.5), hoisted out of the loop: one batched matmul.
    logits = (jnp.dot(hs, wfc_ref[...],
                      preferred_element_type=jnp.float32) + bfc_ref[...]) * 2.0

    # Single dense slab store; batch-pad drop happens in the wrapper.
    out_ref[...] = logits


def text_generation_forward(ids, params):
    """ids: (T, B) int token indices. Returns (T, B, V) float32 logits / 0.5."""
    T, B = ids.shape
    H = params["w_hh_l0"].shape[1]
    V = params["w_ih_l0"].shape[1]
    B_pad = ((B + 7) // 8) * 8          # pad batch to full f32 sublane tiles

    ids_p = jnp.zeros((T, B_pad), jnp.int32).at[:, :B].set(ids.astype(jnp.int32))
    ids_flat = ids_p.reshape(T * B_pad, 1)

    # Pre-transpose weights so the kernel only does x @ W (MXU friendly).
    wih0T = params["w_ih_l0"].T                                   # (V, 4H)
    whh0T = params["w_hh_l0"].T                                   # (H, 4H)
    b0 = (params["b_ih_l0"] + params["b_hh_l0"]).reshape(1, 4 * H)
    wih1T = params["w_ih_l1"].T                                   # (H, 4H)
    whh1T = params["w_hh_l1"].T                                   # (H, 4H)
    b1 = (params["b_ih_l1"] + params["b_hh_l1"]).reshape(1, 4 * H)
    wfcT = params["fc_w"].T                                       # (H, V)
    bfc = params["fc_b"].reshape(1, V)

    kernel = functools.partial(_lstm_textgen_kernel,
                               T=T, B_pad=B_pad, H=H, V=V)
    vmem_spec = lambda: pl.BlockSpec(memory_space=pltpu.MemorySpace.VMEM)

    out = pl.pallas_call(
        kernel,
        out_shape=jax.ShapeDtypeStruct((T * B_pad, V), jnp.float32),
        in_specs=[vmem_spec() for _ in range(9)],
        out_specs=vmem_spec(),
    )(ids_flat, wih0T, whh0T, b0, wih1T, whh1T, b1, wfcT, bfc)

    # Drop batch padding / reshape in XLA (fuses with the copy out of the kernel).
    return out.reshape(T, B_pad, V)[:, :B, :]


def init_params(key, vocab_size, hidden):
    """Deterministic PyTorch-style uniform(-1/sqrt(H), 1/sqrt(H)) init."""
    k = 1.0 / jnp.sqrt(hidden)
    names_shapes = [
        ("w_ih_l0", (4 * hidden, vocab_size)),
        ("w_hh_l0", (4 * hidden, hidden)),
        ("b_ih_l0", (4 * hidden,)),
        ("b_hh_l0", (4 * hidden,)),
        ("w_ih_l1", (4 * hidden, hidden)),
        ("w_hh_l1", (4 * hidden, hidden)),
        ("b_ih_l1", (4 * hidden,)),
        ("b_hh_l1", (4 * hidden,)),
        ("fc_w", (vocab_size, hidden)),
        ("fc_b", (vocab_size,)),
    ]
    keys = jax.random.split(key, len(names_shapes))
    return {
        name: jax.random.uniform(kk, shape, jnp.float32, -k, k)
        for kk, (name, shape) in zip(keys, names_shapes)
    }


def reference_forward(ids, params):
    """Pure-JAX reference (lax.scan) of the same forward pass."""
    T, B = ids.shape
    V = params["w_ih_l0"].shape[1]
    H = params["w_hh_l0"].shape[1]
    x = jax.nn.one_hot(ids, V, dtype=jnp.float32)                 # (T, B, V)

    def cell(x_t, h, c, wih, whh, bih, bhh):
        gates = x_t @ wih.T + h @ whh.T + bih + bhh
        i, f, g, o = jnp.split(gates, 4, axis=-1)
        c = jax.nn.sigmoid(f) * c + jax.nn.sigmoid(i) * jnp.tanh(g)
        h = jax.nn.sigmoid(o) * jnp.tanh(c)
        return h, c

    def step(carry, x_t):
        h0, c0, h1, c1 = carry
        h0, c0 = cell(x_t, h0, c0, params["w_ih_l0"], params["w_hh_l0"],
                      params["b_ih_l0"], params["b_hh_l0"])
        h1, c1 = cell(h0, h1, c1, params["w_ih_l1"], params["w_hh_l1"],
                      params["b_ih_l1"], params["b_hh_l1"])
        return (h0, c0, h1, c1), h1

    zeros = jnp.zeros((B, H), jnp.float32)
    _, hs = lax.scan(step, (zeros, zeros, zeros, zeros), x)
    return (hs @ params["fc_w"].T + params["fc_b"]) / 0.5


if __name__ == "__main__":
    # Small shapes consistent with the module's forward:
    #   seq_length=8, batch_size=4, vocabulary_size=32, lstm_num_hidden=32, 2 layers.
    T, B, V, H = 8, 4, 32, 32

    key = jax.random.PRNGKey(0)
    k_ids, k_params = jax.random.split(key)
    ids = jax.random.randint(k_ids, (T, B), 0, V, dtype=jnp.int32)
    params = init_params(k_params, V, H)

    out = text_generation_forward(ids, params)
    out = jax.block_until_ready(out)

    ref = jax.block_until_ready(reference_forward(ids, params))
    assert out.shape == (T, B, V)
    assert jnp.allclose(out, ref, atol=1e-3, rtol=1e-3), "mismatch vs reference"

    # TODO(synk): generate_text() (greedy autoregressive sampling) is a host-side
    # loop around this forward; not implemented as a kernel.
    print("KERNEL_OK")
</pallas_src>

<mosaic_0001>
module attributes {stable_mosaic.version = 11 : i64} {
  func.func @_lstm_textgen_kernel(%arg0: memref<64x1xi32, #tpu.memory_space<vmem>>, %arg1: memref<32x128xf32, #tpu.memory_space<vmem>>, %arg2: memref<32x128xf32, #tpu.memory_space<vmem>>, %arg3: memref<1x128xf32, #tpu.memory_space<vmem>>, %arg4: memref<32x128xf32, #tpu.memory_space<vmem>>, %arg5: memref<32x128xf32, #tpu.memory_space<vmem>>, %arg6: memref<1x128xf32, #tpu.memory_space<vmem>>, %arg7: memref<32x32xf32, #tpu.memory_space<vmem>>, %arg8: memref<1x32xf32, #tpu.memory_space<vmem>>, %arg9: memref<64x32xf32, #tpu.memory_space<vmem>>) attributes {dimension_semantics = [], scalar_prefetch = 0 : i64, scratch_operands = 0 : i64, tpu.core_type = #tpu.core_type<tc>} {
    %c0 = arith.constant 0 : index
    %c0_0 = arith.constant 0 : index
    %0 = vector.load %arg0[%c0, %c0_0] : memref<64x1xi32, #tpu.memory_space<vmem>>, vector<64x1xi32>
    %1 = tpu.iota {dimensions = array<i32: 1>} : vector<64x32xi32>
    %2 = vector.broadcast %0 : vector<64x1xi32> to vector<64x32xi32>
    %3 = arith.cmpi eq, %2, %1 : vector<64x32xi32>
    %4 = arith.extui %3 : vector<64x32xi1> to vector<64x32xi32>
    %5 = arith.sitofp %4 : vector<64x32xi32> to vector<64x32xf32>
    %c0_1 = arith.constant 0 : index
    %c0_2 = arith.constant 0 : index
    %6 = vector.load %arg1[%c0_1, %c0_2] : memref<32x128xf32, #tpu.memory_space<vmem>>, vector<32x128xf32>
    %cst = arith.constant dense<0.000000e+00> : vector<64x128xf32>
    %7 = tpu.matmul %5, %6, %cst {dimension_numbers = #tpu.dot_dimension_numbers<[1], [0], [0], [1], [0, 0, 1, 1], [], []>} : vector<64x32xf32>, vector<32x128xf32>, vector<64x128xf32> -> vector<64x128xf32>
    %c0_3 = arith.constant 0 : index
    %c0_4 = arith.constant 0 : index
    %8 = vector.load %arg3[%c0_3, %c0_4] : memref<1x128xf32, #tpu.memory_space<vmem>>, vector<1x128xf32>
    %9 = vector.broadcast %8 : vector<1x128xf32> to vector<64x128xf32>
    %10 = arith.addf %7, %9 : vector<64x128xf32>
    %c0_5 = arith.constant 0 : index
    %c0_6 = arith.constant 0 : index
    %11 = vector.load %arg2[%c0_5, %c0_6] : memref<32x128xf32, #tpu.memory_space<vmem>>, vector<32x128xf32>
    %c0_7 = arith.constant 0 : index
    %c0_8 = arith.constant 0 : index
    %12 = vector.load %arg4[%c0_7, %c0_8] : memref<32x128xf32, #tpu.memory_space<vmem>>, vector<32x128xf32>
    %c0_9 = arith.constant 0 : index
    %c0_10 = arith.constant 0 : index
    %13 = vector.load %arg5[%c0_9, %c0_10] : memref<32x128xf32, #tpu.memory_space<vmem>>, vector<32x128xf32>
    %c0_11 = arith.constant 0 : index
    %c0_12 = arith.constant 0 : index
    %14 = vector.load %arg6[%c0_11, %c0_12] : memref<1x128xf32, #tpu.memory_space<vmem>>, vector<1x128xf32>
    %15 = vector.shape_cast %14 : vector<1x128xf32> to vector<1x128xf32>
    %16 = vector.broadcast %15 : vector<1x128xf32> to vector<8x128xf32>
    %cst_13 = arith.constant 0.000000e+00 : f32
    %17 = vector.broadcast %cst_13 : f32 to vector<8x32xf32>
    %18 = vector.extract_strided_slice %10 {offsets = [0, 0], sizes = [8, 128], strides = [1, 1]} : vector<64x128xf32> to vector<8x128xf32>
    %cst_14 = arith.constant dense<0.000000e+00> : vector<8x128xf32>
    %19 = tpu.matmul %17, %11, %cst_14 {dimension_numbers = #tpu.dot_dimension_numbers<[1], [0], [0], [1], [0, 0, 1, 1], [], []>} : vector<8x32xf32>, vector<32x128xf32>, vector<8x128xf32> -> vector<8x128xf32>
    %20 = arith.addf %18, %19 : vector<8x128xf32>
    %21 = arith.negf %20 : vector<8x128xf32>
    %22 = math.exp %21 : vector<8x128xf32>
    %cst_15 = arith.constant 1.000000e+00 : f32
    %23 = vector.broadcast %cst_15 : f32 to vector<8x128xf32>
    %24 = arith.addf %23, %22 : vector<8x128xf32>
    %25 = arith.divf %23, %24 : vector<8x128xf32>
    %26 = math.tanh %20 : vector<8x128xf32>
    %27 = vector.extract_strided_slice %25 {offsets = [0, 0], sizes = [8, 32], strides = [1, 1]} : vector<8x128xf32> to vector<8x32xf32>
    %28 = vector.extract_strided_slice %25 {offsets = [0, 32], sizes = [8, 32], strides = [1, 1]} : vector<8x128xf32> to vector<8x32xf32>
    %29 = vector.extract_strided_slice %26 {offsets = [0, 64], sizes = [8, 32], strides = [1, 1]} : vector<8x128xf32> to vector<8x32xf32>
    %30 = vector.extract_strided_slice %25 {offsets = [0, 96], sizes = [8, 32], strides = [1, 1]} : vector<8x128xf32> to vector<8x32xf32>
    %31 = arith.mulf %28, %17 : vector<8x32xf32>
    %32 = arith.mulf %27, %29 : vector<8x32xf32>
    %33 = arith.addf %31, %32 : vector<8x32xf32>
    %34 = math.tanh %33 : vector<8x32xf32>
    %35 = arith.mulf %30, %34 : vector<8x32xf32>
    %cst_16 = arith.constant dense<0.000000e+00> : vector<8x128xf32>
    %36 = tpu.matmul %35, %12, %cst_16 {dimension_numbers = #tpu.dot_dimension_numbers<[1], [0], [0], [1], [0, 0, 1, 1], [], []>} : vector<8x32xf32>, vector<32x128xf32>, vector<8x128xf32> -> vector<8x128xf32>
    %cst_17 = arith.constant dense<0.000000e+00> : vector<8x128xf32>
    %37 = tpu.matmul %17, %13, %cst_17 {dimension_numbers = #tpu.dot_dimension_numbers<[1], [0], [0], [1], [0, 0, 1, 1], [], []>} : vector<8x32xf32>, vector<32x128xf32>, vector<8x128xf32> -> vector<8x128xf32>
    %38 = arith.addf %36, %37 : vector<8x128xf32>
    %39 = arith.addf %38, %16 : vector<8x128xf32>
    %40 = arith.negf %39 : vector<8x128xf32>
    %41 = math.exp %40 : vector<8x128xf32>
    %cst_18 = arith.constant 1.000000e+00 : f32
    %42 = vector.broadcast %cst_18 : f32 to vector<8x128xf32>
    %43 = arith.addf %42, %41 : vector<8x128xf32>
    %44 = arith.divf %42, %43 : vector<8x128xf32>
    %45 = math.tanh %39 : vector<8x128xf32>
    %46 = vector.extract_strided_slice %44 {offsets = [0, 0], sizes = [8, 32], strides = [1, 1]} : vector<8x128xf32> to vector<8x32xf32>
    %47 = vector.extract_strided_slice %44 {offsets = [0, 32], sizes = [8, 32], strides = [1, 1]} : vector<8x128xf32> to vector<8x32xf32>
    %48 = vector.extract_strided_slice %45 {offsets = [0, 64], sizes = [8, 32], strides = [1, 1]} : vector<8x128xf32> to vector<8x32xf32>
    %49 = vector.extract_strided_slice %44 {offsets = [0, 96], sizes = [8, 32], strides = [1, 1]} : vector<8x128xf32> to vector<8x32xf32>
    %50 = arith.mulf %47, %17 : vector<8x32xf32>
    %51 = arith.mulf %46, %48 : vector<8x32xf32>
    %52 = arith.addf %50, %51 : vector<8x32xf32>
    %53 = math.tanh %52 : vector<8x32xf32>
    %54 = arith.mulf %49, %53 : vector<8x32xf32>
    %55 = vector.extract_strided_slice %10 {offsets = [8, 0], sizes = [8, 128], strides = [1, 1]} : vector<64x128xf32> to vector<8x128xf32>
    %cst_19 = arith.constant dense<0.000000e+00> : vector<8x128xf32>
    %56 = tpu.matmul %35, %11, %cst_19 {dimension_numbers = #tpu.dot_dimension_numbers<[1], [0], [0], [1], [0, 0, 1, 1], [], []>} : vector<8x32xf32>, vector<32x128xf32>, vector<8x128xf32> -> vector<8x128xf32>
    %57 = arith.addf %55, %56 : vector<8x128xf32>
    %58 = arith.negf %57 : vector<8x128xf32>
    %59 = math.exp %58 : vector<8x128xf32>
    %cst_20 = arith.constant 1.000000e+00 : f32
    %60 = vector.broadcast %cst_20 : f32 to vector<8x128xf32>
    %61 = arith.addf %60, %59 : vector<8x128xf32>
    %62 = arith.divf %60, %61 : vector<8x128xf32>
    %63 = math.tanh %57 : vector<8x128xf32>
    %64 = vector.extract_strided_slice %62 {offsets = [0, 0], sizes = [8, 32], strides = [1, 1]} : vector<8x128xf32> to vector<8x32xf32>
    %65 = vector.extract_strided_slice %62 {offsets = [0, 32], sizes = [8, 32], strides = [1, 1]} : vector<8x128xf32> to vector<8x32xf32>
    %66 = vector.extract_strided_slice %63 {offsets = [0, 64], sizes = [8, 32], strides = [1, 1]} : vector<8x128xf32> to vector<8x32xf32>
    %67 = vector.extract_strided_slice %62 {offsets = [0, 96], sizes = [8, 32], strides = [1, 1]} : vector<8x128xf32> to vector<8x32xf32>
    %68 = arith.mulf %65, %33 : vector<8x32xf32>
    %69 = arith.mulf %64, %66 : vector<8x32xf32>
    %70 = arith.addf %68, %69 : vector<8x32xf32>
    %71 = math.tanh %70 : vector<8x32xf32>
    %72 = arith.mulf %67, %71 : vector<8x32xf32>
    %cst_21 = arith.constant dense<0.000000e+00> : vector<8x128xf32>
    %73 = tpu.matmul %72, %12, %cst_21 {dimension_numbers = #tpu.dot_dimension_numbers<[1], [0], [0], [1], [0, 0, 1, 1], [], []>} : vector<8x32xf32>, vector<32x128xf32>, vector<8x128xf32> -> vector<8x128xf32>
    %cst_22 = arith.constant dense<0.000000e+00> : vector<8x128xf32>
    %74 = tpu.matmul %54, %13, %cst_22 {dimension_numbers = #tpu.dot_dimension_numbers<[1], [0], [0], [1], [0, 0, 1, 1], [], []>} : vector<8x32xf32>, vector<32x128xf32>, vector<8x128xf32> -> vector<8x128xf32>
    %75 = arith.addf %73, %74 : vector<8x128xf32>
    %76 = arith.addf %75, %16 : vector<8x128xf32>
    %77 = arith.negf %76 : vector<8x128xf32>
    %78 = math.exp %77 : vector<8x128xf32>
    %cst_23 = arith.constant 1.000000e+00 : f32
    %79 = vector.broadcast %cst_23 : f32 to vector<8x128xf32>
    %80 = arith.addf %79, %78 : vector<8x128xf32>
    %81 = arith.divf %79, %80 : vector<8x128xf32>
    %82 = math.tanh %76 : vector<8x128xf32>
    %83 = vector.extract_strided_slice %81 {offsets = [0, 0], sizes = [8, 32], strides = [1, 1]} : vector<8x128xf32> to vector<8x32xf32>
    %84 = vector.extract_strided_slice %81 {offsets = [0, 32], sizes = [8, 32], strides = [1, 1]} : vector<8x128xf32> to vector<8x32xf32>
    %85 = vector.extract_strided_slice %82 {offsets = [0, 64], sizes = [8, 32], strides = [1, 1]} : vector<8x128xf32> to vector<8x32xf32>
    %86 = vector.extract_strided_slice %81 {offsets = [0, 96], sizes = [8, 32], strides = [1, 1]} : vector<8x128xf32> to vector<8x32xf32>
    %87 = arith.mulf %84, %52 : vector<8x32xf32>
    %88 = arith.mulf %83, %85 : vector<8x32xf32>
    %89 = arith.addf %87, %88 : vector<8x32xf32>
    %90 = math.tanh %89 : vector<8x32xf32>
    %91 = arith.mulf %86, %90 : vector<8x32xf32>
    %92 = vector.extract_strided_slice %10 {offsets = [16, 0], sizes = [8, 128], strides = [1, 1]} : vector<64x128xf32> to vector<8x128xf32>
    %cst_24 = arith.constant dense<0.000000e+00> : vector<8x128xf32>
    %93 = tpu.matmul %72, %11, %cst_24 {dimension_numbers = #tpu.dot_dimension_numbers<[1], [0], [0], [1], [0, 0, 1, 1], [], []>} : vector<8x32xf32>, vector<32x128xf32>, vector<8x128xf32> -> vector<8x128xf32>
    %94 = arith.addf %92, %93 : vector<8x128xf32>
    %95 = arith.negf %94 : vector<8x128xf32>
    %96 = math.exp %95 : vector<8x128xf32>
    %cst_25 = arith.constant 1.000000e+00 : f32
    %97 = vector.broadcast %cst_25 : f32 to vector<8x128xf32>
    %98 = arith.addf %97, %96 : vector<8x128xf32>
    %99 = arith.divf %97, %98 : vector<8x128xf32>
    %100 = math.tanh %94 : vector<8x128xf32>
    %101 = vector.extract_strided_slice %99 {offsets = [0, 0], sizes = [8, 32], strides = [1, 1]} : vector<8x128xf32> to vector<8x32xf32>
    %102 = vector.extract_strided_slice %99 {offsets = [0, 32], sizes = [8, 32], strides = [1, 1]} : vector<8x128xf32> to vector<8x32xf32>
    %103 = vector.extract_strided_slice %100 {offsets = [0, 64], sizes = [8, 32], strides = [1, 1]} : vector<8x128xf32> to vector<8x32xf32>
    %104 = vector.extract_strided_slice %99 {offsets = [0, 96], sizes = [8, 32], strides = [1, 1]} : vector<8x128xf32> to vector<8x32xf32>
    %105 = arith.mulf %102, %70 : vector<8x32xf32>
    %106 = arith.mulf %101, %103 : vector<8x32xf32>
    %107 = arith.addf %105, %106 : vector<8x32xf32>
    %108 = math.tanh %107 : vector<8x32xf32>
    %109 = arith.mulf %104, %108 : vector<8x32xf32>
    %cst_26 = arith.constant dense<0.000000e+00> : vector<8x128xf32>
    %110 = tpu.matmul %109, %12, %cst_26 {dimension_numbers = #tpu.dot_dimension_numbers<[1], [0], [0], [1], [0, 0, 1, 1], [], []>} : vector<8x32xf32>, vector<32x128xf32>, vector<8x128xf32> -> vector<8x128xf32>
    %cst_27 = arith.constant dense<0.000000e+00> : vector<8x128xf32>
    %111 = tpu.matmul %91, %13, %cst_27 {dimension_numbers = #tpu.dot_dimension_numbers<[1], [0], [0], [1], [0, 0, 1, 1], [], []>} : vector<8x32xf32>, vector<32x128xf32>, vector<8x128xf32> -> vector<8x128xf32>
    %112 = arith.addf %110, %111 : vector<8x128xf32>
    %113 = arith.addf %112, %16 : vector<8x128xf32>
    %114 = arith.negf %113 : vector<8x128xf32>
    %115 = math.exp %114 : vector<8x128xf32>
    %cst_28 = arith.constant 1.000000e+00 : f32
    %116 = vector.broadcast %cst_28 : f32 to vector<8x128xf32>
    %117 = arith.addf %116, %115 : vector<8x128xf32>
    %118 = arith.divf %116, %117 : vector<8x128xf32>
    %119 = math.tanh %113 : vector<8x128xf32>
    %120 = vector.extract_strided_slice %118 {offsets = [0, 0], sizes = [8, 32], strides = [1, 1]} : vector<8x128xf32> to vector<8x32xf32>
    %121 = vector.extract_strided_slice %118 {offsets = [0, 32], sizes = [8, 32], strides = [1, 1]} : vector<8x128xf32> to vector<8x32xf32>
    %122 = vector.extract_strided_slice %119 {offsets = [0, 64], sizes = [8, 32], strides = [1, 1]} : vector<8x128xf32> to vector<8x32xf32>
    %123 = vector.extract_strided_slice %118 {offsets = [0, 96], sizes = [8, 32], strides = [1, 1]} : vector<8x128xf32> to vector<8x32xf32>
    %124 = arith.mulf %121, %89 : vector<8x32xf32>
    %125 = arith.mulf %120, %122 : vector<8x32xf32>
    %126 = arith.addf %124, %125 : vector<8x32xf32>
    %127 = math.tanh %126 : vector<8x32xf32>
    %128 = arith.mulf %123, %127 : vector<8x32xf32>
    %129 = vector.extract_strided_slice %10 {offsets = [24, 0], sizes = [8, 128], strides = [1, 1]} : vector<64x128xf32> to vector<8x128xf32>
    %cst_29 = arith.constant dense<0.000000e+00> : vector<8x128xf32>
    %130 = tpu.matmul %109, %11, %cst_29 {dimension_numbers = #tpu.dot_dimension_numbers<[1], [0], [0], [1], [0, 0, 1, 1], [], []>} : vector<8x32xf32>, vector<32x128xf32>, vector<8x128xf32> -> vector<8x128xf32>
    %131 = arith.addf %129, %130 : vector<8x128xf32>
    %132 = arith.negf %131 : vector<8x128xf32>
    %133 = math.exp %132 : vector<8x128xf32>
    %cst_30 = arith.constant 1.000000e+00 : f32
    %134 = vector.broadcast %cst_30 : f32 to vector<8x128xf32>
    %135 = arith.addf %134, %133 : vector<8x128xf32>
    %136 = arith.divf %134, %135 : vector<8x128xf32>
    %137 = math.tanh %131 : vector<8x128xf32>
    %138 = vector.extract_strided_slice %136 {offsets = [0, 0], sizes = [8, 32], strides = [1, 1]} : vector<8x128xf32> to vector<8x32xf32>
    %139 = vector.extract_strided_slice %136 {offsets = [0, 32], sizes = [8, 32], strides = [1, 1]} : vector<8x128xf32> to vector<8x32xf32>
    %140 = vector.extract_strided_slice %137 {offsets = [0, 64], sizes = [8, 32], strides = [1, 1]} : vector<8x128xf32> to vector<8x32xf32>
    %141 = vector.extract_strided_slice %136 {offsets = [0, 96], sizes = [8, 32], strides = [1, 1]} : vector<8x128xf32> to vector<8x32xf32>
    %142 = arith.mulf %139, %107 : vector<8x32xf32>
    %143 = arith.mulf %138, %140 : vector<8x32xf32>
    %144 = arith.addf %142, %143 : vector<8x32xf32>
    %145 = math.tanh %144 : vector<8x32xf32>
    %146 = arith.mulf %141, %145 : vector<8x32xf32>
    %cst_31 = arith.constant dense<0.000000e+00> : vector<8x128xf32>
    %147 = tpu.matmul %146, %12, %cst_31 {dimension_numbers = #tpu.dot_dimension_numbers<[1], [0], [0], [1], [0, 0, 1, 1], [], []>} : vector<8x32xf32>, vector<32x128xf32>, vector<8x128xf32> -> vector<8x128xf32>
    %cst_32 = arith.constant dense<0.000000e+00> : vector<8x128xf32>
    %148 = tpu.matmul %128, %13, %cst_32 {dimension_numbers = #tpu.dot_dimension_numbers<[1], [0], [0], [1], [0, 0, 1, 1], [], []>} : vector<8x32xf32>, vector<32x128xf32>, vector<8x128xf32> -> vector<8x128xf32>
    %149 = arith.addf %147, %148 : vector<8x128xf32>
    %150 = arith.addf %149, %16 : vector<8x128xf32>
    %151 = arith.negf %150 : vector<8x128xf32>
    %152 = math.exp %151 : vector<8x128xf32>
    %cst_33 = arith.constant 1.000000e+00 : f32
    %153 = vector.broadcast %cst_33 : f32 to vector<8x128xf32>
    %154 = arith.addf %153, %152 : vector<8x128xf32>
    %155 = arith.divf %153, %154 : vector<8x128xf32>
    %156 = math.tanh %150 : vector<8x128xf32>
    %157 = vector.extract_strided_slice %155 {offsets = [0, 0], sizes = [8, 32], strides = [1, 1]} : vector<8x128xf32> to vector<8x32xf32>
    %158 = vector.extract_strided_slice %155 {offsets = [0, 32], sizes = [8, 32], strides = [1, 1]} : vector<8x128xf32> to vector<8x32xf32>
    %159 = vector.extract_strided_slice %156 {offsets = [0, 64], sizes = [8, 32], strides = [1, 1]} : vector<8x128xf32> to vector<8x32xf32>
    %160 = vector.extract_strided_slice %155 {offsets = [0, 96], sizes = [8, 32], strides = [1, 1]} : vector<8x128xf32> to vector<8x32xf32>
    %161 = arith.mulf %158, %126 : vector<8x32xf32>
    %162 = arith.mulf %157, %159 : vector<8x32xf32>
    %163 = arith.addf %161, %162 : vector<8x32xf32>
    %164 = math.tanh %163 : vector<8x32xf32>
    %165 = arith.mulf %160, %164 : vector<8x32xf32>
    %166 = vector.extract_strided_slice %10 {offsets = [32, 0], sizes = [8, 128], strides = [1, 1]} : vector<64x128xf32> to vector<8x128xf32>
    %cst_34 = arith.constant dense<0.000000e+00> : vector<8x128xf32>
    %167 = tpu.matmul %146, %11, %cst_34 {dimension_numbers = #tpu.dot_dimension_numbers<[1], [0], [0], [1], [0, 0, 1, 1], [], []>} : vector<8x32xf32>, vector<32x128xf32>, vector<8x128xf32> -> vector<8x128xf32>
    %168 = arith.addf %166, %167 : vector<8x128xf32>
    %169 = arith.negf %168 : vector<8x128xf32>
    %170 = math.exp %169 : vector<8x128xf32>
    %cst_35 = arith.constant 1.000000e+00 : f32
    %171 = vector.broadcast %cst_35 : f32 to vector<8x128xf32>
    %172 = arith.addf %171, %170 : vector<8x128xf32>
    %173 = arith.divf %171, %172 : vector<8x128xf32>
    %174 = math.tanh %168 : vector<8x128xf32>
    %175 = vector.extract_strided_slice %173 {offsets = [0, 0], sizes = [8, 32], strides = [1, 1]} : vector<8x128xf32> to vector<8x32xf32>
    %176 = vector.extract_strided_slice %173 {offsets = [0, 32], sizes = [8, 32], strides = [1, 1]} : vector<8x128xf32> to vector<8x32xf32>
    %177 = vector.extract_strided_slice %174 {offsets = [0, 64], sizes = [8, 32], strides = [1, 1]} : vector<8x128xf32> to vector<8x32xf32>
    %178 = vector.extract_strided_slice %173 {offsets = [0, 96], sizes = [8, 32], strides = [1, 1]} : vector<8x128xf32> to vector<8x32xf32>
    %179 = arith.mulf %176, %144 : vector<8x32xf32>
    %180 = arith.mulf %175, %177 : vector<8x32xf32>
    %181 = arith.addf %179, %180 : vector<8x32xf32>
    %182 = math.tanh %181 : vector<8x32xf32>
    %183 = arith.mulf %178, %182 : vector<8x32xf32>
    %cst_36 = arith.constant dense<0.000000e+00> : vector<8x128xf32>
    %184 = tpu.matmul %183, %12, %cst_36 {dimension_numbers = #tpu.dot_dimension_numbers<[1], [0], [0], [1], [0, 0, 1, 1], [], []>} : vector<8x32xf32>, vector<32x128xf32>, vector<8x128xf32> -> vector<8x128xf32>
    %cst_37 = arith.constant dense<0.000000e+00> : vector<8x128xf32>
    %185 = tpu.matmul %165, %13, %cst_37 {dimension_numbers = #tpu.dot_dimension_numbers<[1], [0], [0], [1], [0, 0, 1, 1], [], []>} : vector<8x32xf32>, vector<32x128xf32>, vector<8x128xf32> -> vector<8x128xf32>
    %186 = arith.addf %184, %185 : vector<8x128xf32>
    %187 = arith.addf %186, %16 : vector<8x128xf32>
    %188 = arith.negf %187 : vector<8x128xf32>
    %189 = math.exp %188 : vector<8x128xf32>
    %cst_38 = arith.constant 1.000000e+00 : f32
    %190 = vector.broadcast %cst_38 : f32 to vector<8x128xf32>
    %191 = arith.addf %190, %189 : vector<8x128xf32>
    %192 = arith.divf %190, %191 : vector<8x128xf32>
    %193 = math.tanh %187 : vector<8x128xf32>
    %194 = vector.extract_strided_slice %192 {offsets = [0, 0], sizes = [8, 32], strides = [1, 1]} : vector<8x128xf32> to vector<8x32xf32>
    %195 = vector.extract_strided_slice %192 {offsets = [0, 32], sizes = [8, 32], strides = [1, 1]} : vector<8x128xf32> to vector<8x32xf32>
    %196 = vector.extract_strided_slice %193 {offsets = [0, 64], sizes = [8, 32], strides = [1, 1]} : vector<8x128xf32> to vector<8x32xf32>
    %197 = vector.extract_strided_slice %192 {offsets = [0, 96], sizes = [8, 32], strides = [1, 1]} : vector<8x128xf32> to vector<8x32xf32>
    %198 = arith.mulf %195, %163 : vector<8x32xf32>
    %199 = arith.mulf %194, %196 : vector<8x32xf32>
    %200 = arith.addf %198, %199 : vector<8x32xf32>
    %201 = math.tanh %200 : vector<8x32xf32>
    %202 = arith.mulf %197, %201 : vector<8x32xf32>
    %203 = vector.extract_strided_slice %10 {offsets = [40, 0], sizes = [8, 128], strides = [1, 1]} : vector<64x128xf32> to vector<8x128xf32>
    %cst_39 = arith.constant dense<0.000000e+00> : vector<8x128xf32>
    %204 = tpu.matmul %183, %11, %cst_39 {dimension_numbers = #tpu.dot_dimension_numbers<[1], [0], [0], [1], [0, 0, 1, 1], [], []>} : vector<8x32xf32>, vector<32x128xf32>, vector<8x128xf32> -> vector<8x128xf32>
    %205 = arith.addf %203, %204 : vector<8x128xf32>
    %206 = arith.negf %205 : vector<8x128xf32>
    %207 = math.exp %206 : vector<8x128xf32>
    %cst_40 = arith.constant 1.000000e+00 : f32
    %208 = vector.broadcast %cst_40 : f32 to vector<8x128xf32>
    %209 = arith.addf %208, %207 : vector<8x128xf32>
    %210 = arith.divf %208, %209 : vector<8x128xf32>
    %211 = math.tanh %205 : vector<8x128xf32>
    %212 = vector.extract_strided_slice %210 {offsets = [0, 0], sizes = [8, 32], strides = [1, 1]} : vector<8x128xf32> to vector<8x32xf32>
    %213 = vector.extract_strided_slice %210 {offsets = [0, 32], sizes = [8, 32], strides = [1, 1]} : vector<8x128xf32> to vector<8x32xf32>
    %214 = vector.extract_strided_slice %211 {offsets = [0, 64], sizes = [8, 32], strides = [1, 1]} : vector<8x128xf32> to vector<8x32xf32>
    %215 = vector.extract_strided_slice %210 {offsets = [0, 96], sizes = [8, 32], strides = [1, 1]} : vector<8x128xf32> to vector<8x32xf32>
    %216 = arith.mulf %213, %181 : vector<8x32xf32>
    %217 = arith.mulf %212, %214 : vector<8x32xf32>
    %218 = arith.addf %216, %217 : vector<8x32xf32>
    %219 = math.tanh %218 : vector<8x32xf32>
    %220 = arith.mulf %215, %219 : vector<8x32xf32>
    %cst_41 = arith.constant dense<0.000000e+00> : vector<8x128xf32>
    %221 = tpu.matmul %220, %12, %cst_41 {dimension_numbers = #tpu.dot_dimension_numbers<[1], [0], [0], [1], [0, 0, 1, 1], [], []>} : vector<8x32xf32>, vector<32x128xf32>, vector<8x128xf32> -> vector<8x128xf32>
    %cst_42 = arith.constant dense<0.000000e+00> : vector<8x128xf32>
    %222 = tpu.matmul %202, %13, %cst_42 {dimension_numbers = #tpu.dot_dimension_numbers<[1], [0], [0], [1], [0, 0, 1, 1], [], []>} : vector<8x32xf32>, vector<32x128xf32>, vector<8x128xf32> -> vector<8x128xf32>
    %223 = arith.addf %221, %222 : vector<8x128xf32>
    %224 = arith.addf %223, %16 : vector<8x128xf32>
    %225 = arith.negf %224 : vector<8x128xf32>
    %226 = math.exp %225 : vector<8x128xf32>
    %cst_43 = arith.constant 1.000000e+00 : f32
    %227 = vector.broadcast %cst_43 : f32 to vector<8x128xf32>
    %228 = arith.addf %227, %226 : vector<8x128xf32>
    %229 = arith.divf %227, %228 : vector<8x128xf32>
    %230 = math.tanh %224 : vector<8x128xf32>
    %231 = vector.extract_strided_slice %229 {offsets = [0, 0], sizes = [8, 32], strides = [1, 1]} : vector<8x128xf32> to vector<8x32xf32>
    %232 = vector.extract_strided_slice %229 {offsets = [0, 32], sizes = [8, 32], strides = [1, 1]} : vector<8x128xf32> to vector<8x32xf32>
    %233 = vector.extract_strided_slice %230 {offsets = [0, 64], sizes = [8, 32], strides = [1, 1]} : vector<8x128xf32> to vector<8x32xf32>
    %234 = vector.extract_strided_slice %229 {offsets = [0, 96], sizes = [8, 32], strides = [1, 1]} : vector<8x128xf32> to vector<8x32xf32>
    %235 = arith.mulf %232, %200 : vector<8x32xf32>
    %236 = arith.mulf %231, %233 : vector<8x32xf32>
    %237 = arith.addf %235, %236 : vector<8x32xf32>
    %238 = math.tanh %237 : vector<8x32xf32>
    %239 = arith.mulf %234, %238 : vector<8x32xf32>
    %240 = vector.extract_strided_slice %10 {offsets = [48, 0], sizes = [8, 128], strides = [1, 1]} : vector<64x128xf32> to vector<8x128xf32>
    %cst_44 = arith.constant dense<0.000000e+00> : vector<8x128xf32>
    %241 = tpu.matmul %220, %11, %cst_44 {dimension_numbers = #tpu.dot_dimension_numbers<[1], [0], [0], [1], [0, 0, 1, 1], [], []>} : vector<8x32xf32>, vector<32x128xf32>, vector<8x128xf32> -> vector<8x128xf32>
    %242 = arith.addf %240, %241 : vector<8x128xf32>
    %243 = arith.negf %242 : vector<8x128xf32>
    %244 = math.exp %243 : vector<8x128xf32>
    %cst_45 = arith.constant 1.000000e+00 : f32
    %245 = vector.broadcast %cst_45 : f32 to vector<8x128xf32>
    %246 = arith.addf %245, %244 : vector<8x128xf32>
    %247 = arith.divf %245, %246 : vector<8x128xf32>
    %248 = math.tanh %242 : vector<8x128xf32>
    %249 = vector.extract_strided_slice %247 {offsets = [0, 0], sizes = [8, 32], strides = [1, 1]} : vector<8x128xf32> to vector<8x32xf32>
    %250 = vector.extract_strided_slice %247 {offsets = [0, 32], sizes = [8, 32], strides = [1, 1]} : vector<8x128xf32> to vector<8x32xf32>
    %251 = vector.extract_strided_slice %248 {offsets = [0, 64], sizes = [8, 32], strides = [1, 1]} : vector<8x128xf32> to vector<8x32xf32>
    %252 = vector.extract_strided_slice %247 {offsets = [0, 96], sizes = [8, 32], strides = [1, 1]} : vector<8x128xf32> to vector<8x32xf32>
    %253 = arith.mulf %250, %218 : vector<8x32xf32>
    %254 = arith.mulf %249, %251 : vector<8x32xf32>
    %255 = arith.addf %253, %254 : vector<8x32xf32>
    %256 = math.tanh %255 : vector<8x32xf32>
    %257 = arith.mulf %252, %256 : vector<8x32xf32>
    %cst_46 = arith.constant dense<0.000000e+00> : vector<8x128xf32>
    %258 = tpu.matmul %257, %12, %cst_46 {dimension_numbers = #tpu.dot_dimension_numbers<[1], [0], [0], [1], [0, 0, 1, 1], [], []>} : vector<8x32xf32>, vector<32x128xf32>, vector<8x128xf32> -> vector<8x128xf32>
    %cst_47 = arith.constant dense<0.000000e+00> : vector<8x128xf32>
    %259 = tpu.matmul %239, %13, %cst_47 {dimension_numbers = #tpu.dot_dimension_numbers<[1], [0], [0], [1], [0, 0, 1, 1], [], []>} : vector<8x32xf32>, vector<32x128xf32>, vector<8x128xf32> -> vector<8x128xf32>
    %260 = arith.addf %258, %259 : vector<8x128xf32>
    %261 = arith.addf %260, %16 : vector<8x128xf32>
    %262 = arith.negf %261 : vector<8x128xf32>
    %263 = math.exp %262 : vector<8x128xf32>
    %cst_48 = arith.constant 1.000000e+00 : f32
    %264 = vector.broadcast %cst_48 : f32 to vector<8x128xf32>
    %265 = arith.addf %264, %263 : vector<8x128xf32>
    %266 = arith.divf %264, %265 : vector<8x128xf32>
    %267 = math.tanh %261 : vector<8x128xf32>
    %268 = vector.extract_strided_slice %266 {offsets = [0, 0], sizes = [8, 32], strides = [1, 1]} : vector<8x128xf32> to vector<8x32xf32>
    %269 = vector.extract_strided_slice %266 {offsets = [0, 32], sizes = [8, 32], strides = [1, 1]} : vector<8x128xf32> to vector<8x32xf32>
    %270 = vector.extract_strided_slice %267 {offsets = [0, 64], sizes = [8, 32], strides = [1, 1]} : vector<8x128xf32> to vector<8x32xf32>
    %271 = vector.extract_strided_slice %266 {offsets = [0, 96], sizes = [8, 32], strides = [1, 1]} : vector<8x128xf32> to vector<8x32xf32>
    %272 = arith.mulf %269, %237 : vector<8x32xf32>
    %273 = arith.mulf %268, %270 : vector<8x32xf32>
    %274 = arith.addf %272, %273 : vector<8x32xf32>
    %275 = math.tanh %274 : vector<8x32xf32>
    %276 = arith.mulf %271, %275 : vector<8x32xf32>
    %277 = vector.extract_strided_slice %10 {offsets = [56, 0], sizes = [8, 128], strides = [1, 1]} : vector<64x128xf32> to vector<8x128xf32>
    %cst_49 = arith.constant dense<0.000000e+00> : vector<8x128xf32>
    %278 = tpu.matmul %257, %11, %cst_49 {dimension_numbers = #tpu.dot_dimension_numbers<[1], [0], [0], [1], [0, 0, 1, 1], [], []>} : vector<8x32xf32>, vector<32x128xf32>, vector<8x128xf32> -> vector<8x128xf32>
    %279 = arith.addf %277, %278 : vector<8x128xf32>
    %280 = arith.negf %279 : vector<8x128xf32>
    %281 = math.exp %280 : vector<8x128xf32>
    %cst_50 = arith.constant 1.000000e+00 : f32
    %282 = vector.broadcast %cst_50 : f32 to vector<8x128xf32>
    %283 = arith.addf %282, %281 : vector<8x128xf32>
    %284 = arith.divf %282, %283 : vector<8x128xf32>
    %285 = math.tanh %279 : vector<8x128xf32>
    %286 = vector.extract_strided_slice %284 {offsets = [0, 0], sizes = [8, 32], strides = [1, 1]} : vector<8x128xf32> to vector<8x32xf32>
    %287 = vector.extract_strided_slice %284 {offsets = [0, 32], sizes = [8, 32], strides = [1, 1]} : vector<8x128xf32> to vector<8x32xf32>
    %288 = vector.extract_strided_slice %285 {offsets = [0, 64], sizes = [8, 32], strides = [1, 1]} : vector<8x128xf32> to vector<8x32xf32>
    %289 = vector.extract_strided_slice %284 {offsets = [0, 96], sizes = [8, 32], strides = [1, 1]} : vector<8x128xf32> to vector<8x32xf32>
    %290 = arith.mulf %287, %255 : vector<8x32xf32>
    %291 = arith.mulf %286, %288 : vector<8x32xf32>
    %292 = arith.addf %290, %291 : vector<8x32xf32>
    %293 = math.tanh %292 : vector<8x32xf32>
    %294 = arith.mulf %289, %293 : vector<8x32xf32>
    %cst_51 = arith.constant dense<0.000000e+00> : vector<8x128xf32>
    %295 = tpu.matmul %294, %12, %cst_51 {dimension_numbers = #tpu.dot_dimension_numbers<[1], [0], [0], [1], [0, 0, 1, 1], [], []>} : vector<8x32xf32>, vector<32x128xf32>, vector<8x128xf32> -> vector<8x128xf32>
    %cst_52 = arith.constant dense<0.000000e+00> : vector<8x128xf32>
    %296 = tpu.matmul %276, %13, %cst_52 {dimension_numbers = #tpu.dot_dimension_numbers<[1], [0], [0], [1], [0, 0, 1, 1], [], []>} : vector<8x32xf32>, vector<32x128xf32>, vector<8x128xf32> -> vector<8x128xf32>
    %297 = arith.addf %295, %296 : vector<8x128xf32>
    %298 = arith.addf %297, %16 : vector<8x128xf32>
    %299 = arith.negf %298 : vector<8x128xf32>
    %300 = math.exp %299 : vector<8x128xf32>
    %cst_53 = arith.constant 1.000000e+00 : f32
    %301 = vector.broadcast %cst_53 : f32 to vector<8x128xf32>
    %302 = arith.addf %301, %300 : vector<8x128xf32>
    %303 = arith.divf %301, %302 : vector<8x128xf32>
    %304 = math.tanh %298 : vector<8x128xf32>
    %305 = vector.extract_strided_slice %303 {offsets = [0, 0], sizes = [8, 32], strides = [1, 1]} : vector<8x128xf32> to vector<8x32xf32>
    %306 = vector.extract_strided_slice %303 {offsets = [0, 32], sizes = [8, 32], strides = [1, 1]} : vector<8x128xf32> to vector<8x32xf32>
    %307 = vector.extract_strided_slice %304 {offsets = [0, 64], sizes = [8, 32], strides = [1, 1]} : vector<8x128xf32> to vector<8x32xf32>
    %308 = vector.extract_strided_slice %303 {offsets = [0, 96], sizes = [8, 32], strides = [1, 1]} : vector<8x128xf32> to vector<8x32xf32>
    %309 = arith.mulf %306, %274 : vector<8x32xf32>
    %310 = arith.mulf %305, %307 : vector<8x32xf32>
    %311 = arith.addf %309, %310 : vector<8x32xf32>
    %312 = math.tanh %311 : vector<8x32xf32>
    %313 = arith.mulf %308, %312 : vector<8x32xf32>
    %314 = tpu.concatenate %54, %91, %128, %165, %202, %239, %276, %313 in 0 : vector<8x32xf32>, vector<8x32xf32>, vector<8x32xf32>, vector<8x32xf32>, vector<8x32xf32>, vector<8x32xf32>, vector<8x32xf32>, vector<8x32xf32> -> vector<64x32xf32>
    %c0_54 = arith.constant 0 : index
    %c0_55 = arith.constant 0 : index
    %315 = vector.load %arg7[%c0_54, %c0_55] : memref<32x32xf32, #tpu.memory_space<vmem>>, vector<32x32xf32>
    %cst_56 = arith.constant dense<0.000000e+00> : vector<64x32xf32>
    %316 = tpu.matmul %314, %315, %cst_56 {dimension_numbers = #tpu.dot_dimension_numbers<[1], [0], [0], [1], [0, 0, 1, 1], [], []>} : vector<64x32xf32>, vector<32x32xf32>, vector<64x32xf32> -> vector<64x32xf32>
    %c0_57 = arith.constant 0 : index
    %c0_58 = arith.constant 0 : index
    %317 = vector.load %arg8[%c0_57, %c0_58] : memref<1x32xf32, #tpu.memory_space<vmem>>, vector<1x32xf32>
    %318 = vector.broadcast %317 : vector<1x32xf32> to vector<64x32xf32>
    %319 = arith.addf %316, %318 : vector<64x32xf32>
    %cst_59 = arith.constant 2.000000e+00 : f32
    %320 = vector.broadcast %cst_59 : f32 to vector<64x32xf32>
    %321 = arith.mulf %319, %320 : vector<64x32xf32>
    %c0_60 = arith.constant 0 : index
    %c0_61 = arith.constant 0 : index
    %322 = vector.load %arg9[%c0_60, %c0_61] : memref<64x32xf32, #tpu.memory_space<vmem>>, vector<64x32xf32>
    tpu.vector_store %arg9[%c0_60, %c0_61], %321 {strides = array<i32>} : memref<64x32xf32, #tpu.memory_space<vmem>>, vector<64x32xf32>,
    return
  }
}

</mosaic_0001>

<bundles_post_ra>
// kernel: tpu_custom_call.1
= control target key start
LH: loop header
LB: loop body
LE: loop exit
PB: predicated region body
PF: predicated region fallthrough
CT: control target
= control target key end

     0   :  { %14 = vsyncpa [#allocation3], 0  ;;  %s2287_s0 = inlined_call_operand.vmem [shape: s32[64,1], index: 0, kind: input, shape index: {}]   ;;  %s2288_s1 = inlined_call_operand.vmem [shape: f32[32,128], index: 1, kind: input, shape index: {}]   ;;  %s2289_s2 = inlined_call_operand.vmem [shape: f32[32,128], index: 2, kind: input, shape index: {}]   ;;  %s2290_s3 = inlined_call_operand.vmem [shape: f32[1,128], index: 3, kind: input, shape index: {}]   ;;  %s2291_s4 = inlined_call_operand.hbm [shape: f32[32,128], index: 4, kind: input, shape index: {}]   ;;  %s2292_s5 = inlined_call_operand.hbm [shape: f32[32,128], index: 5, kind: input, shape index: {}]   ;;  %s2293_s6 = inlined_call_operand.vmem [shape: f32[1,128], index: 6, kind: input, shape index: {}]   ;;  %s2294_s7 = inlined_call_operand.hbm [shape: f32[32,32], index: 7, kind: input, shape index: {}]   ;;  %s2295_s8 = inlined_call_operand.vmem [shape: f32[1,32], index: 8, kind: input, shape index: {}]   ;;  %s2296_s9 = inlined_call_operand.vmem [shape: f32[64,32], index: 9, kind: output, shape index: {}]  }
   0x1   :  { %15 = vsyncpa [#allocation5], 0  ;;  %s41_s11 = sshll.u32 %s2292_s5, 4  ;;  %s1777_s12 = smov [#allocation4]   ;;  %s42_s11 = int_to_ptr.hbm [resolvable:$true] %s41_s11 }
   0x2   :  { %s43_s13 = sshll.u32 %s1777_s12, 4  ;;  %s28_s16 = sshll.u32 %s2291_s4, 4  ;;  %s44_s13 = int_to_ptr.vmem [resolvable:$true] %s43_s13  ;;  %s29_s16 = int_to_ptr.hbm [resolvable:$true] %s28_s16 }
   0x3   :  { %s1778_s17 = smov 128   ;;  %s1779_s18 = smov 8  }
   0x4   :  { %49 = dma.hbm_to_vmem [thread:$0]  %s42_s11, 512, %s44_s13, [#allocation5], %s1778_s17, %s1778_s17, %s1779_s18  }
   0x5   :  { %s1780_s19 = smov [#allocation2]   ;;  %s56_s23 = sshll.u32 %s2294_s7, 4  ;;  %s57_s23 = int_to_ptr.hbm [resolvable:$true] %s56_s23 }
   0x6   :  { %s30_s20 = sshll.u32 %s1780_s19, 4  ;;  %s1781_s5 = smov [#allocation6]   ;;  %s31_s20 = int_to_ptr.vmem [resolvable:$true] %s30_s20 }
   0x7   :  { %36 = dma.hbm_to_vmem [thread:$0]  %s29_s16, 512, %s31_s20, [#allocation3], %s1778_s17, %s1778_s17, %s1779_s18  }
   0x8   :  { %s58_s24 = sshll.u32 %s1781_s5, 4  ;;  %s59_s24 = int_to_ptr.vmem [resolvable:$true] %s58_s24 }
   0x9   :  { %64 = dma.hbm_to_vmem [thread:$0]  %s57_s23, 512, %s59_s24, [#allocation5], %s1778_s17, %s1778_s17, %s1779_s18  }
   0xa   :  { %1773 = dma.done.wait [#allocation3], 512  }
   0xb   :  { %1774 = vsyncadd [#allocation3], 4294966784 }
   0xc   :  { %1775 = dma.done.wait [#allocation5], 1024  }
   0xd   :  { %1776 = vsyncadd [#allocation5], 4294966272  ;;  %v1782_v0 = vmov 0   ;;  %v81_v1 = vld [vmem:[%s2287_s0 + $0x10] sm:$0xff]  ;;  %v79_v2 = vld [vmem:[%s2287_s0] sm:$0xff]  ;;  %v87_v14 = vlaneseq  ;;  %vm145_vm0 = vcmask 261120  }
   0xe   :  { %1552 = vset.pattern.permute.xlu0 %v1782_v0  ;;  %1553 = vset.pattern.permute.xlu1 %v1782_v0  ;;  %v140_v3 = vld [vmem:[%s2288_s1 + $0x18] sm:$0xff]  ;;  %v139_v4 = vld [vmem:[%s2288_s1 + $0x10] sm:$0xff]  ;;  %v138_v5 = vld [vmem:[%s2288_s1 + $0x8] sm:$0xff]  ;;  %v1783_v18 = vmov 0.0   ;;  %s1784_s26 = smov 64   ;;  %s1785_s29 = smov 32  }
   0xf   :  { %1554 = vset.pattern.permute.xlu2 %v1782_v0  ;;  %96 = vperm.xlu0 %1552, %v81_v1   ;;  %v82_v6 = vld [vmem:[%s2287_s0 + $0x18] sm:$0xff]  ;;  %v83_v7 = vld [vmem:[%s2287_s0 + $0x20] sm:$0xff]  ;;  %v1880_v11 = vld [vmem:[%s2289_s2 + $0x10] sm:$0xff]  ;;  %v1896_v15 = vand.u32 127, %v87_v14 }
  0x10   :  { %90 = vperm.xlu1 %1553, %v79_v2   ;;  %1531 = vmatpush.msra.mxu1 %v140_v3  ;;  %v86_v8 = vld [vmem:[%s2287_s0 + $0x38] sm:$0xff]  ;;  %v137_v9 = vld [vmem:[%s2288_s1] sm:$0xff]  ;;  %v1887_v12 = vld [vmem:[%s2289_s2 + $0x8] sm:$0xff] }
  0x11   :  { %182 = vmatpush.msra.mxu0 %v140_v3  ;;  %1532 = vmatpush.msra.mxu2 %v140_v3  ;;  %v1875_v10 = vld [vmem:[%s2289_s2 + $0x18] sm:$0xff]  ;;  %v1892_v13 = vld [vmem:[%s2289_s2] sm:$0xff]  ;;  %v85_v33 = vld [vmem:[%s2287_s0 + $0x30] sm:$0xff] }
  0x12   :  { %1533 = vmatpush.msra.mxu3 %v140_v3  ;;  %1534 = vmatpush.msra.mxu1 %v139_v4  ;;  %v1926_v28 = vld [vmem:[%s2290_s3] ss:$0 sm:$0xff]  ;;  %v84_v57 = vld [vmem:[%s2287_s0 + $0x28] sm:$0xff]  ;;  %v1951_v61 = vld [vmem:[#allocation4 + $0x18] sm:$0xff] }
  0x13   :  { %183 = vmatpush.msra.mxu0 %v139_v4  ;;  %1535 = vmatpush.msra.mxu2 %v139_v4  ;;  %v80_v58 = vld [vmem:[%s2287_s0 + $0x8] sm:$0xff]  ;;  %v1953_v62 = vld [vmem:[#allocation2 + $0x18] sm:$0xff]  ;;  %v1955_v63 = vld [vmem:[#allocation4 + $0x10] sm:$0xff] }
  0x14   :  { %1536 = vmatpush.msra.mxu3 %v139_v4  ;;  %1537 = vmatpush.msra.mxu1 %v138_v5  ;;  %v1959_v0 = vld [vmem:[#allocation2 + $0x10] sm:$0xff]  ;;  %v1961_v1 = vld [vmem:[#allocation4 + $0x8] sm:$0xff]  ;;  %v1967_v3 = vld [vmem:[#allocation4] sm:$0xff] }
  0x15   :  { %184 = vmatpush.msra.mxu0 %v138_v5  ;;  %1538 = vmatpush.msra.mxu2 %v138_v5  ;;  %v1963_v2 = vld [vmem:[#allocation2 + $0x8] sm:$0xff]  ;;  %v1969_v4 = vld [vmem:[#allocation2] sm:$0xff] }
  0x16   :  { %1539 = vmatpush.msra.mxu3 %v138_v5  ;;  %1540 = vmatpush.msra.mxu1 %v137_v9 }
  0x17   :  { %99 = vperm.xlu0 %1552, %v82_v6   ;;  %185 = vmatpush.msra.mxu0 %v137_v9 }
  0x18   :  { %1541 = vmatpush.msra.mxu2 %v137_v9  ;;  %1542 = vmatpush.msra.mxu3 %v137_v9 }
  0x19   :  { %242 = vmatpush.msrb.mxu1 %v1875_v10 }
  0x1a   :  { %300 = vmatpush.msrb.mxu2 %v1951_v61  ;;  %325 = vmatpush.msrb.mxu3 %v1953_v62 }
  0x1b   :  { %243 = vmatpush.msrb.mxu1 %v1880_v11 }
  0x1c   :  { %301 = vmatpush.msrb.mxu2 %v1955_v63  ;;  %326 = vmatpush.msrb.mxu3 %v1959_v0 }
  0x1d   :  { %244 = vmatpush.msrb.mxu1 %v1887_v12 }
  0x1e   :  { %302 = vmatpush.msrb.mxu2 %v1961_v1  ;;  %327 = vmatpush.msrb.mxu3 %v1963_v2 }
  0x1f   :  { %102 = vperm.xlu0 %1552, %v83_v7   ;;  %245 = vmatpush.msrb.mxu1 %v1892_v13 }
  0x20   :  { %303 = vmatpush.msrb.mxu2 %v1967_v3  ;;  %328 = vmatpush.msrb.mxu3 %v1969_v4 }
  0x27   :  { %111 = vperm.xlu0 %1552, %v86_v8  }
  0x81   :  { %v97_v16 = vpop.permute.xlu0 %96 }
  0x82   :  { %v91_v17 = vpop.permute.xlu1 %90  ;;  %vm115_vm1 = vcmp.eq.s32.totalorder %v97_v16, %v1896_v15 }
  0x83   :  { %vm113_vm2 = vcmp.eq.s32.totalorder %v91_v17, %v1896_v15  ;;  %v1471_v19 = vsel %vm115_vm1, 1.0, %v1783_v18 }
  0x84   :  { %v1469_v20 = vsel %vm113_vm2, 1.0, %v1783_v18  ;;  %1479 = vmatmul.msk.f32.vlgmr.msra.gmra.mxu1 %vm145_vm0, %v1471_v19 }
  0x85   :  { %1477 = vmatmul.msk.f32.vlgmr.msra.gmra.mxu0 %vm145_vm0, %v1469_v20  ;;  %383 = vmatpush.msra.mxu1 %v1875_v10 }
  0x87   :  { %384 = vmatpush.msra.mxu1 %v1880_v11 }
  0x89   :  { %v100_v21 = vpop.permute.xlu0 %99  ;;  %385 = vmatpush.msra.mxu1 %v1887_v12 }
  0x8a   :  { %vm116_vm3 = vcmp.eq.s32.totalorder %v100_v21, %v1896_v15 }
  0x8b   :  { %v1472_v22 = vsel %vm116_vm3, 1.0, %v1783_v18  ;;  %386 = vmatpush.msra.mxu1 %v1892_v13 }
  0x8c   :  { %1480 = vmatmul.msk.f32.gmra.mxu1 %vm145_vm0, %v1472_v22 }
  0x91   :  { %v103_v23 = vpop.permute.xlu0 %102 }
  0x92   :  { %vm117_vm4 = vcmp.eq.s32.totalorder %v103_v23, %v1896_v15  ;;  %v2016_v23 = vld [vmem:[%s2293_s6] ss:$0 sm:$0xff] }
  0x93   :  { %v1473_v24 = vsel %vm117_vm4, 1.0, %v1783_v18 }
  0x94   :  { %1481 = vmatmul.msk.f32.vlgmr.msra.gmra.mxu2 %vm145_vm0, %v1473_v24  ;;  %246 = vmatmul.f32.vlgmr.msrb.gmra.mxu1 %v1783_v18 }
  0x95   :  { %529 = vmatpush.msrb.mxu1 %v1875_v10  ;;  %446 = vmatpush.msra.mxu2 %v1951_v61 }
  0x97   :  { %530 = vmatpush.msrb.mxu1 %v1880_v11  ;;  %447 = vmatpush.msra.mxu2 %v1955_v63 }
  0x99   :  { %531 = vmatpush.msrb.mxu1 %v1887_v12  ;;  %v112_v51 = vpop.permute.xlu0 %111  ;;  %448 = vmatpush.msra.mxu2 %v1961_v1 }
  0x9a   :  { %vm120_vm10 = vcmp.eq.s32.totalorder %v112_v51, %v1896_v15 }
  0x9b   :  { %532 = vmatpush.msrb.mxu1 %v1892_v13  ;;  %v1476_v52 = vsel %vm120_vm10, 1.0, %v1783_v18  ;;  %449 = vmatpush.msra.mxu2 %v1967_v3 }
 0x101   :  { %v1919_v25 = vpop.f32.mrf.mxu1 }
 0x102   :  { %v187_v27 = vpop.f32.mrf.mxu0 }
 0x103   :  { %v188_v29 = vadd.f32 %v1926_v28, %v187_v27 }
 0x109   :  { %v1921_v26 = vpop.f32.mrf.mxu1 }
 0x111   :  { %v247_v30 = vpop.f32.mrf.mxu1 }
 0x112   :  { %v250_v31 = vadd.f32 %v247_v30, %v188_v29 }
 0x114   :  { %1558 = vtanh.f32 %v250_v31  ;;  %v1485_v34 = vmul.f32 -1.442695, %v250_v31 }
 0x116   :  { %1560 = vpow2.f32 %v1485_v34 }
 0x117   :  { %v2004_v14 = vpop.f32.mrf.mxu2 }
 0x11a   :  { %v1559_v32 = vpop.eup %1558 }
 0x11b   :  { %273 = vrot.lane.b32.xlu1 %v1559_v32, %s1784_s26 }
 0x11c   :  { %v1561_v35 = vpop.eup %1560 }
 0x11d   :  { %v254_v36 = vadd.f32 1.0, %v1561_v35 }
 0x11f   :  { %1562 = vrcp.f32 %v254_v36  ;;  %v266_v42 = vand.u32 2147483648, %v254_v36  ;;  %vm260_vm6 = vweird.f32 %v254_v36  ;;  %v264_v43 = vand.u32 2147483647, %v254_v36 }
 0x121   :  { %v267_v45 = vor.u32 1.1754944e-38, %v266_v42  ;;  %vm265_vm8 = vcmp.eq.f32.partialorder %v264_v43, 8.507059e+37 }
 0x123   :  { %108 = vperm.xlu1 %1553, %v85_v33  }
 0x125   :  { %v1563_v37 = vpop.eup %1562 }
 0x126   :  { %v256_v38 = vmul.f32 %v1563_v37, %v254_v36  ;;  %vm261_vm5 = vweird.f32 %v1563_v37 }
 0x127   :  { %vm262_vm7 = vmor %vm260_vm6, %vm261_vm5 }
 0x128   :  { %v257_v39 = vsub.f32 1.0, %v256_v38 }
 0x12a   :  { %v258_v40 = vmul.f32 %v1563_v37, %v257_v39 }
 0x12c   :  { %v259_v41 = vadd.f32 %v1563_v37, %v258_v40 }
 0x12e   :  { %v263_v44 = vsel %vm262_vm7, %v1563_v37, %v259_v41 }
 0x12f   :  { %v268_v47 = vsel %vm265_vm8, %v267_v45, %v263_v44 }
 0x130   :  { %v271_v53 = vmul.f32 0.0, %v268_v47 }
 0x18d   :  { %v274_v46 = vpop.permute.xlu1 %273 }
 0x18e   :  { %v276_v48 = vmul.f32 %v274_v46, %v268_v47 }
 0x190   :  { %278 = vrot.lane.b32.xlu2 %v276_v48, %s1785_s29 }
 0x195   :  { %v109_v49 = vpop.permute.xlu1 %108 }
 0x196   :  { %vm119_vm9 = vcmp.eq.s32.totalorder %v109_v49, %v1896_v15 }
 0x197   :  { %v1475_v50 = vsel %vm119_vm9, 1.0, %v1783_v18 }
 0x198   :  { %1483 = vmatmul.msk.f32.vlgmr.msra.gmra.mxu3 %vm145_vm0, %v1475_v50 }
 0x199   :  { %471 = vmatpush.msra.mxu3 %v1953_v62 }
 0x19b   :  { %472 = vmatpush.msra.mxu3 %v1959_v0 }
 0x19d   :  { %473 = vmatpush.msra.mxu3 %v1963_v2 }
 0x19f   :  { %474 = vmatpush.msra.mxu3 %v1969_v4 }
 0x1a0   :  { %1484 = vmatmul.msk.f32.gmra.mxu3 %vm145_vm0, %v1476_v52 }
 0x1ea   :  { %v279_v54 = vpop.permute.xlu2 %278 }
 0x1eb   :  { %v1940_v55 = vadd.f32 %v279_v54, %v271_v53 }
 0x1ed   :  { %1564 = vtanh.f32 %v1940_v55 }
 0x1f3   :  { %v1565_v56 = vpop.eup %1564 }
 0x1f4   :  { %284 = vrot.lane.b32.xlu2 %v1565_v56, %s1784_s26 }
 0x1fc   :  { %105 = vperm.xlu2 %1554, %v84_v57  }
 0x204   :  { %93 = vperm.xlu2 %1554, %v80_v58  }
 0x24e   :  { %v285_v59 = vpop.permute.xlu2 %284 }
 0x24f   :  { %v287_v60 = vmul.f32 %v285_v59, %v268_v47 }
 0x251   :  { %309 = vrot.lane.b32.xlu1 %v287_v60, %s1785_s29 }
 0x256   :  { %v106_v5 = vpop.permute.xlu2 %105 }
 0x257   :  { %vm118_vm11 = vcmp.eq.s32.totalorder %v106_v5, %v1896_v15 }
 0x258   :  { %v1474_v6 = vsel %vm118_vm11, 1.0, %v1783_v18 }
 0x259   :  { %1482 = vmatmul.msk.f32.gmra.mxu2 %vm145_vm0, %v1474_v6 }
 0x25e   :  { %v94_v7 = vpop.permute.xlu2 %93 }
 0x25f   :  { %vm114_vm12 = vcmp.eq.s32.totalorder %v94_v7, %v1896_v15  ;;  %v2006_v15 = vpop.f32.mrf.mxu3 }
 0x260   :  { %v1470_v8 = vsel %vm114_vm12, 1.0, %v1783_v18 }
 0x261   :  { %1478 = vmatmul.msk.f32.gmra.mxu0 %vm145_vm0, %v1470_v8  ;;  %304 = vmatmul.f32.vlgmr.msrb.gmra.mxu2 %v1783_v18 }
 0x262   :  { %592 = vmatpush.msrb.mxu2 %v1951_v61 }
 0x264   :  { %593 = vmatpush.msrb.mxu2 %v1955_v63 }
 0x266   :  { %594 = vmatpush.msrb.mxu2 %v1961_v1 }
 0x267   :  { %v2010_v18 = vpop.f32.mrf.mxu3 }
 0x268   :  { %595 = vmatpush.msrb.mxu2 %v1967_v3 }
 0x2c3   :  { %v310_v9 = vpop.permute.xlu1 %309 }
 0x2c4   :  { %1486 = vmatmul.msk.f32.vlgmr.msrb.gmra.mxu3 %vm145_vm0, %v310_v9  ;;  %1488 = vmatmul.msk.f32.vlgmr.msra.gmra.mxu1 %vm145_vm0, %v310_v9 }
 0x2c5   :  { %617 = vmatpush.msrb.mxu3 %v1953_v62  ;;  %675 = vmatpush.msra.mxu1 %v1875_v10 }
 0x2c7   :  { %618 = vmatpush.msrb.mxu3 %v1959_v0  ;;  %676 = vmatpush.msra.mxu1 %v1880_v11 }
 0x2c9   :  { %619 = vmatpush.msrb.mxu3 %v1963_v2  ;;  %677 = vmatpush.msra.mxu1 %v1887_v12 }
 0x2cb   :  { %620 = vmatpush.msrb.mxu3 %v1969_v4  ;;  %678 = vmatpush.msra.mxu1 %v1892_v13 }
 0x2dc   :  { %v2008_v17 = vpop.f32.mrf.mxu2 }
 0x2de   :  { %v190_v16 = vpop.f32.mrf.mxu0 }
 0x2df   :  { %v191_v19 = vadd.f32 %v1926_v28, %v190_v16 }
 0x2e4   :  { %v305_v22 = vpop.f32.mrf.mxu2 }
 0x341   :  { %v388_v20 = vpop.f32.mrf.mxu1 }
 0x342   :  { %v391_v21 = vadd.f32 %v388_v20, %v191_v19 }
 0x344   :  { %1566 = vtanh.f32 %v391_v21  ;;  %v1489_v32 = vmul.f32 -1.442695, %v391_v21 }
 0x347   :  { %v330_v24 = vpop.f32.mrf.mxu3 }
 0x348   :  { %v331_v27 = vadd.f32 %v330_v24, %v305_v22 }
 0x34a   :  { %v1567_v29 = vpop.eup %1566  ;;  %v333_v30 = vadd.f32 %v2016_v23, %v331_v27 }
 0x34b   :  { %414 = vrot.lane.b32.xlu1 %v1567_v29, %s1784_s26 }
 0x34c   :  { %1568 = vtanh.f32 %v333_v30  ;;  %v1487_v33 = vmul.f32 -1.442695, %v333_v30 }
 0x34d   :  { %1570 = vpow2.f32 %v1489_v32  ;;  %v1395_v32 = vld [vmem:[#allocation6 + $0x10] sm:$0xff] }
 0x34e   :  { %1572 = vpow2.f32 %v1487_v33  ;;  %v1393_v33 = vld [vmem:[#allocation6] sm:$0xff] }
 0x352   :  { %v1569_v31 = vpop.eup %1568 }
 0x353   :  { %356 = vrot.lane.b32.xlu0 %v1569_v31, %s1784_s26  ;;  %v1571_v34 = vpop.eup %1570  ;;  %v1396_v31 = vld [vmem:[#allocation6 + $0x18] sm:$0xff] }
 0x354   :  { %v395_v35 = vadd.f32 1.0, %v1571_v34  ;;  %v1573_v36 = vpop.eup %1572  ;;  %1418 = vmatpush.msrb.mxu0 %v1396_v31 }
 0x355   :  { %v337_v37 = vadd.f32 1.0, %v1573_v36  ;;  %v194_v36 = vadd.f32 %v1926_v28, %v1919_v25 }
 0x356   :  { %1574 = vrcp.f32 %v395_v35  ;;  %v407_v46 = vand.u32 2147483648, %v395_v35  ;;  %vm401_vm14 = vweird.f32 %v395_v35  ;;  %v405_v47 = vand.u32 2147483647, %v395_v35  ;;  %1419 = vmatpush.msrb.mxu0 %v1395_v32 }
 0x357   :  { %1576 = vrcp.f32 %v337_v37  ;;  %v349_v56 = vand.u32 2147483648, %v337_v37  ;;  %vm343_vm3 = vweird.f32 %v337_v37  ;;  %v347_v57 = vand.u32 2147483647, %v337_v37 }
 0x358   :  { %v408_v50 = vor.u32 1.1754944e-38, %v407_v46  ;;  %vm406_vm1 = vcmp.eq.f32.partialorder %v405_v47, 8.507059e+37 }
 0x359   :  { %v350_v59 = vor.u32 1.1754944e-38, %v349_v56  ;;  %vm348_vm5 = vcmp.eq.f32.partialorder %v347_v57, 8.507059e+37 }
 0x35c   :  { %v1575_v38 = vpop.eup %1574 }
 0x35d   :  { %v397_v39 = vmul.f32 %v1575_v38, %v395_v35  ;;  %v1577_v41 = vpop.eup %1576  ;;  %vm402_vm13 = vweird.f32 %v1575_v38 }
 0x35e   :  { %v339_v43 = vmul.f32 %v1577_v41, %v337_v37  ;;  %vm403_vm15 = vmor %vm401_vm14, %vm402_vm13  ;;  %vm344_vm2 = vweird.f32 %v1577_v41 }
 0x35f   :  { %v398_v40 = vsub.f32 1.0, %v397_v39  ;;  %vm345_vm4 = vmor %vm343_vm3, %vm344_vm2  ;;  %v2055_v39 = vld [vmem:[%s2295_s8] ss:$0 sm:$0xff] }
 0x360   :  { %v340_v45 = vsub.f32 1.0, %v339_v43 }
 0x361   :  { %v399_v42 = vmul.f32 %v1575_v38, %v398_v40 }
 0x362   :  { %v341_v49 = vmul.f32 %v1577_v41, %v340_v45 }
 0x363   :  { %v400_v44 = vadd.f32 %v1575_v38, %v399_v42 }
 0x364   :  { %v342_v54 = vadd.f32 %v1577_v41, %v341_v49 }
 0x365   :  { %v404_v48 = vsel %vm403_vm15, %v1575_v38, %v400_v44 }
 0x366   :  { %v409_v52 = vsel %vm406_vm1, %v408_v50, %v404_v48  ;;  %v346_v58 = vsel %vm345_vm4, %v1577_v41, %v342_v54 }
 0x367   :  { %v351_v5 = vsel %vm348_vm5, %v350_v59, %v346_v58  ;;  %v412_v19 = vmul.f32 %v409_v52, %v1940_v55  ;;  %v1394_v55 = vld [vmem:[#allocation6 + $0x8] sm:$0xff] }
 0x368   :  { %v354_v7 = vmul.f32 0.0, %v351_v5  ;;  %1420 = vmatpush.msrb.mxu0 %v1394_v55 }
 0x36a   :  { %1421 = vmatpush.msrb.mxu0 %v1393_v33 }
 0x3bd   :  { %v415_v51 = vpop.permute.xlu1 %414 }
 0x3be   :  { %v417_v53 = vmul.f32 %v415_v51, %v409_v52 }
 0x3c0   :  { %419 = vrot.lane.b32.xlu0 %v417_v53, %s1785_s29 }
 0x3c5   :  { %v357_v60 = vpop.permute.xlu0 %356 }
 0x3c6   :  { %v359_v6 = vmul.f32 %v357_v60, %v351_v5 }
 0x3c8   :  { %361 = vrot.lane.b32.xlu2 %v359_v6, %s1785_s29 }
 0x422   :  { %v362_v8 = vpop.permute.xlu2 %361 }
 0x423   :  { %v2023_v9 = vadd.f32 %v362_v8, %v354_v7 }
 0x425   :  { %1578 = vtanh.f32 %v2023_v9 }
 0x42b   :  { %v1579_v16 = vpop.eup %1578 }
 0x42c   :  { %367 = vrot.lane.b32.xlu1 %v1579_v16, %s1784_s26 }
 0x432   :  { %v420_v20 = vpop.permute.xlu0 %419 }
 0x433   :  { %v2028_v21 = vadd.f32 %v420_v20, %v412_v19 }
 0x435   :  { %1580 = vtanh.f32 %v2028_v21 }
 0x43b   :  { %v1581_v22 = vpop.eup %1580 }
 0x43c   :  { %425 = vrot.lane.b32.xlu2 %v1581_v22, %s1784_s26 }
 0x496   :  { %v426_v24 = vpop.permute.xlu2 %425 }
 0x497   :  { %v428_v27 = vmul.f32 %v426_v24, %v409_v52 }
 0x499   :  { %455 = vrot.lane.b32.xlu1 %v428_v27, %s1785_s29 }
 0x49e   :  { %v368_v29 = vpop.permute.xlu1 %367 }
 0x49f   :  { %v370_v30 = vmul.f32 %v368_v29, %v351_v5 }
 0x4a1   :  { %430 = vrot.lane.b32.xlu0 %v370_v30, %s1785_s29 }
 0x50b   :  { %v456_v34 = vpop.permute.xlu1 %455 }
 0x50c   :  { %1491 = vmatmul.msk.f32.vlgmr.msra.gmra.mxu3 %vm145_vm0, %v456_v34  ;;  %1493 = vmatmul.msk.f32.vlgmr.msrb.gmra.mxu1 %vm145_vm0, %v456_v34 }
 0x50d   :  { %763 = vmatpush.msra.mxu3 %v1953_v62  ;;  %821 = vmatpush.msrb.mxu1 %v1875_v10 }
 0x50f   :  { %764 = vmatpush.msra.mxu3 %v1959_v0  ;;  %822 = vmatpush.msrb.mxu1 %v1880_v11 }
 0x511   :  { %765 = vmatpush.msra.mxu3 %v1963_v2  ;;  %823 = vmatpush.msrb.mxu1 %v1887_v12 }
 0x513   :  { %v431_v35 = vpop.permute.xlu0 %430  ;;  %766 = vmatpush.msra.mxu3 %v1969_v4  ;;  %824 = vmatpush.msrb.mxu1 %v1892_v13 }
 0x514   :  { %1490 = vmatmul.msk.f32.vlgmr.msra.gmra.mxu2 %vm145_vm0, %v431_v35  ;;  %1523 = vmatmul.msk.f32.vlgmr.msrb.gmra.mxu0 %vm145_vm0, %v431_v35 }
 0x515   :  { %738 = vmatpush.msra.mxu2 %v1951_v61 }
 0x517   :  { %739 = vmatpush.msra.mxu2 %v1955_v63 }
 0x519   :  { %740 = vmatpush.msra.mxu2 %v1961_v1 }
 0x51b   :  { %741 = vmatpush.msra.mxu2 %v1967_v3 }
 0x589   :  { %v534_v37 = vpop.f32.mrf.mxu1 }
 0x58a   :  { %v537_v38 = vadd.f32 %v534_v37, %v194_v36 }
 0x58c   :  { %1582 = vtanh.f32 %v537_v38  ;;  %v1494_v49 = vmul.f32 -1.442695, %v537_v38 }
 0x58f   :  { %v476_v25 = vpop.f32.mrf.mxu3 }
 0x591   :  { %v1423_v40 = vpop.f32.mrf.mxu0 }
 0x592   :  { %v1583_v41 = vpop.eup %1582  ;;  %v1424_v42 = vadd.f32 %v2055_v39, %v1423_v40 }
 0x593   :  { %560 = vrot.lane.b32.xlu0 %v1583_v41, %s1784_s26 }
 0x594   :  { %v1447_v43 = vmul.f32 2.0, %v1424_v42 }
 0x596   :  { %1455 = vst.msk [vmem:[%s2296_s9] sm:$0xff] %vm145_vm0, %v1447_v43 }
 0x597   :  { %v451_v44 = vpop.f32.mrf.mxu2 }
 0x598   :  { %v477_v45 = vadd.f32 %v476_v25, %v451_v44 }
 0x59a   :  { %v479_v46 = vadd.f32 %v2016_v23, %v477_v45 }
 0x59c   :  { %1584 = vtanh.f32 %v479_v46  ;;  %v1492_v48 = vmul.f32 -1.442695, %v479_v46 }
 0x59e   :  { %1586 = vpow2.f32 %v1492_v48 }
 0x59f   :  { %1588 = vpow2.f32 %v1494_v49 }
 0x5a2   :  { %v1585_v47 = vpop.eup %1584 }
 0x5a3   :  { %502 = vrot.lane.b32.xlu2 %v1585_v47, %s1784_s26 }
 0x5a4   :  { %v1587_v50 = vpop.eup %1586 }
 0x5a5   :  { %v483_v51 = vadd.f32 1.0, %v1587_v50  ;;  %v1589_v52 = vpop.eup %1588 }
 0x5a6   :  { %v541_v53 = vadd.f32 1.0, %v1589_v52 }
 0x5a7   :  { %1590 = vrcp.f32 %v483_v51  ;;  %v495_v7 = vand.u32 2147483648, %v483_v51  ;;  %vm489_vm7 = vweird.f32 %v483_v51  ;;  %v493_v8 = vand.u32 2147483647, %v483_v51 }
 0x5a8   :  { %1592 = vrcp.f32 %v541_v53  ;;  %v553_v30 = vand.u32 2147483648, %v541_v53  ;;  %vm547_vm11 = vweird.f32 %v541_v53  ;;  %v551_v31 = vand.u32 2147483647, %v541_v53 }
 0x5a9   :  { %v496_v20 = vor.u32 1.1754944e-38, %v495_v7  ;;  %vm494_vm9 = vcmp.eq.f32.partialorder %v493_v8, 8.507059e+37 }
 0x5aa   :  { %v554_v55 = vor.u32 1.1754944e-38, %v553_v30  ;;  %vm552_vm13 = vcmp.eq.f32.partialorder %v551_v31, 8.507059e+37 }
 0x5ad   :  { %v1591_v54 = vpop.eup %1590 }
 0x5ae   :  { %v485_v56 = vmul.f32 %v1591_v54, %v483_v51  ;;  %v1593_v58 = vpop.eup %1592  ;;  %vm490_vm6 = vweird.f32 %v1591_v54  ;;  %v197_v51 = vadd.f32 %v1926_v28, %v1921_v26 }
 0x5af   :  { %v543_v60 = vmul.f32 %v1593_v58, %v541_v53  ;;  %vm491_vm8 = vmor %vm489_vm7, %vm490_vm6  ;;  %vm548_vm10 = vweird.f32 %v1593_v58 }
 0x5b0   :  { %v486_v57 = vsub.f32 1.0, %v485_v56  ;;  %vm549_vm12 = vmor %vm547_vm11, %vm548_vm10 }
 0x5b1   :  { %v544_v6 = vsub.f32 1.0, %v543_v60 }
 0x5b2   :  { %v487_v59 = vmul.f32 %v1591_v54, %v486_v57 }
 0x5b3   :  { %v545_v19 = vmul.f32 %v1593_v58, %v544_v6 }
 0x5b4   :  { %v488_v5 = vadd.f32 %v1591_v54, %v487_v59 }
 0x5b5   :  { %v546_v29 = vadd.f32 %v1593_v58, %v545_v19 }
 0x5b6   :  { %v492_v16 = vsel %vm491_vm8, %v1591_v54, %v488_v5 }
 0x5b7   :  { %v497_v24 = vsel %vm494_vm9, %v496_v20, %v492_v16  ;;  %v550_v32 = vsel %vm549_vm12, %v1593_v58, %v546_v29 }
 0x5b8   :  { %v555_v34 = vsel %vm552_vm13, %v554_v55, %v550_v32  ;;  %v500_v41 = vmul.f32 %v497_v24, %v2023_v9 }
 0x5b9   :  { %v558_v36 = vmul.f32 %v555_v34, %v2028_v21 }
 0x5fd   :  { %v503_v22 = vpop.permute.xlu2 %502 }
 0x5fe   :  { %v505_v27 = vmul.f32 %v503_v22, %v497_v24 }
 0x600   :  { %507 = vrot.lane.b32.xlu1 %v505_v27, %s1785_s29 }
 0x605   :  { %v561_v33 = vpop.permute.xlu0 %560 }
 0x606   :  { %v563_v35 = vmul.f32 %v561_v33, %v555_v34 }
 0x608   :  { %565 = vrot.lane.b32.xlu2 %v563_v35, %s1785_s29 }
 0x662   :  { %v566_v37 = vpop.permute.xlu2 %565 }
 0x663   :  { %v2068_v38 = vadd.f32 %v566_v37, %v558_v36 }
 0x665   :  { %1594 = vtanh.f32 %v2068_v38 }
 0x66b   :  { %v1595_v40 = vpop.eup %1594 }
 0x66c   :  { %571 = vrot.lane.b32.xlu1 %v1595_v40, %s1784_s26 }
 0x672   :  { %v508_v42 = vpop.permute.xlu1 %507 }
 0x673   :  { %v2073_v43 = vadd.f32 %v508_v42, %v500_v41 }
 0x675   :  { %1596 = vtanh.f32 %v2073_v43 }
 0x67b   :  { %v1597_v25 = vpop.eup %1596 }
 0x67c   :  { %513 = vrot.lane.b32.xlu0 %v1597_v25, %s1784_s26 }
 0x6de   :  { %v572_v44 = vpop.permute.xlu1 %571 }
 0x6df   :  { %v574_v21 = vmul.f32 %v572_v44, %v555_v34 }
 0x6e1   :  { %601 = vrot.lane.b32.xlu0 %v574_v21, %s1785_s29 }
 0x6ee   :  { %v514_v45 = vpop.permute.xlu0 %513 }
 0x6ef   :  { %v516_v46 = vmul.f32 %v514_v45, %v497_v24 }
 0x6f1   :  { %576 = vrot.lane.b32.xlu2 %v516_v46, %s1785_s29 }
 0x74b   :  { %v577_v47 = vpop.permute.xlu2 %576 }
 0x74c   :  { %1495 = vmatmul.msk.f32.vlgmr.msrb.gmra.mxu2 %vm145_vm0, %v577_v47  ;;  %1524 = vmatmul.msk.f32.gmra.mxu0 %vm145_vm0, %v577_v47 }
 0x74d   :  { %884 = vmatpush.msrb.mxu2 %v1951_v61 }
 0x74f   :  { %885 = vmatpush.msrb.mxu2 %v1955_v63 }
 0x751   :  { %886 = vmatpush.msrb.mxu2 %v1961_v1 }
 0x753   :  { %v602_v9 = vpop.permute.xlu0 %601  ;;  %887 = vmatpush.msrb.mxu2 %v1967_v3 }
 0x754   :  { %1496 = vmatmul.msk.f32.vlgmr.msrb.gmra.mxu3 %vm145_vm0, %v602_v9  ;;  %1498 = vmatmul.msk.f32.vlgmr.msra.gmra.mxu1 %vm145_vm0, %v602_v9 }
 0x755   :  { %909 = vmatpush.msrb.mxu3 %v1953_v62  ;;  %967 = vmatpush.msra.mxu1 %v1875_v10 }
 0x757   :  { %910 = vmatpush.msrb.mxu3 %v1959_v0  ;;  %968 = vmatpush.msra.mxu1 %v1880_v11 }
 0x759   :  { %911 = vmatpush.msrb.mxu3 %v1963_v2  ;;  %969 = vmatpush.msra.mxu1 %v1887_v12 }
 0x75b   :  { %912 = vmatpush.msrb.mxu3 %v1969_v4  ;;  %970 = vmatpush.msra.mxu1 %v1892_v13 }
 0x7c9   :  { %v1426_v48 = vpop.f32.mrf.mxu0 }
 0x7ca   :  { %v1427_v49 = vadd.f32 %v2055_v39, %v1426_v48 }
 0x7cc   :  { %v1448_v50 = vmul.f32 2.0, %v1427_v49 }
 0x7ce   :  { %1456 = vst.msk [vmem:[%s2296_s9 + $0x8] sm:$0xff] %vm145_vm0, %v1448_v50 }
 0x7cf   :  { %v597_v54 = vpop.f32.mrf.mxu2 }
 0x7d1   :  { %v680_v52 = vpop.f32.mrf.mxu1 }
 0x7d2   :  { %v683_v53 = vadd.f32 %v680_v52, %v197_v51 }
 0x7d4   :  { %1598 = vtanh.f32 %v683_v53  ;;  %v1499_v5 = vmul.f32 -1.442695, %v683_v53 }
 0x7d7   :  { %v622_v56 = vpop.f32.mrf.mxu3 }
 0x7d8   :  { %v623_v57 = vadd.f32 %v622_v56, %v597_v54 }
 0x7da   :  { %v1599_v58 = vpop.eup %1598  ;;  %v625_v59 = vadd.f32 %v2016_v23, %v623_v57 }
 0x7db   :  { %706 = vrot.lane.b32.xlu2 %v1599_v58, %s1784_s26 }
 0x7dc   :  { %1600 = vtanh.f32 %v625_v59  ;;  %v1497_v19 = vmul.f32 -1.442695, %v625_v59 }
 0x7dd   :  { %1602 = vpow2.f32 %v1499_v5 }
 0x7e2   :  { %v1601_v60 = vpop.eup %1600 }
 0x7e3   :  { %648 = vrot.lane.b32.xlu1 %v1601_v60, %s1784_s26  ;;  %v1603_v6 = vpop.eup %1602 }
 0x7e4   :  { %v687_v7 = vadd.f32 1.0, %v1603_v6 }
 0x7e6   :  { %1604 = vrcp.f32 %v687_v7  ;;  %v699_v24 = vand.u32 2147483648, %v687_v7  ;;  %vm693_vm15 = vweird.f32 %v687_v7  ;;  %v697_v27 = vand.u32 2147483647, %v687_v7 }
 0x7e7   :  { %1606 = vpow2.f32 %v1497_v19 }
 0x7e8   :  { %v700_v31 = vor.u32 1.1754944e-38, %v699_v24  ;;  %vm698_vm2 = vcmp.eq.f32.partialorder %v697_v27, 8.507059e+37 }
 0x7ec   :  { %v1605_v26 = vpop.eup %1604 }
 0x7ed   :  { %v689_v8 = vmul.f32 %v1605_v26, %v687_v7  ;;  %vm694_vm14 = vweird.f32 %v1605_v26  ;;  %v1607_v29 = vpop.eup %1606 }
 0x7ee   :  { %vm695_vm1 = vmor %vm693_vm15, %vm694_vm14  ;;  %v629_v32 = vadd.f32 1.0, %v1607_v29 }
 0x7ef   :  { %v690_v16 = vsub.f32 1.0, %v689_v8 }
 0x7f0   :  { %1608 = vrcp.f32 %v629_v32  ;;  %v641_v42 = vand.u32 2147483648, %v629_v32  ;;  %vm635_vm4 = vweird.f32 %v629_v32  ;;  %v639_v25 = vand.u32 2147483647, %v629_v32 }
 0x7f1   :  { %v691_v20 = vmul.f32 %v1605_v26, %v690_v16 }
 0x7f2   :  { %v642_v21 = vor.u32 1.1754944e-38, %v641_v42  ;;  %vm640_vm6 = vcmp.eq.f32.partialorder %v639_v25, 8.507059e+37 }
 0x7f3   :  { %v692_v22 = vadd.f32 %v1605_v26, %v691_v20 }
 0x7f5   :  { %v696_v30 = vsel %vm695_vm1, %v1605_v26, %v692_v22 }
 0x7f6   :  { %v701_v33 = vsel %vm698_vm2, %v700_v31, %v696_v30  ;;  %v1609_v35 = vpop.eup %1608 }
 0x7f7   :  { %v631_v36 = vmul.f32 %v1609_v35, %v629_v32  ;;  %vm636_vm3 = vweird.f32 %v1609_v35  ;;  %v704_v9 = vmul.f32 %v701_v33, %v2068_v38 }
 0x7f8   :  { %vm637_vm5 = vmor %vm635_vm4, %vm636_vm3 }
 0x7f9   :  { %v632_v37 = vsub.f32 1.0, %v631_v36 }
 0x7fb   :  { %v633_v40 = vmul.f32 %v1609_v35, %v632_v37 }
 0x7fd   :  { %v634_v41 = vadd.f32 %v1609_v35, %v633_v40 }
 0x7ff   :  { %v638_v44 = vsel %vm637_vm5, %v1609_v35, %v634_v41 }
 0x800   :  { %v643_v46 = vsel %vm640_vm6, %v642_v21, %v638_v44 }
 0x801   :  { %v646_v51 = vmul.f32 %v643_v46, %v2073_v43 }
 0x835   :  { %v707_v55 = vpop.permute.xlu2 %706 }
 0x836   :  { %v709_v34 = vmul.f32 %v707_v55, %v701_v33 }
 0x838   :  { %711 = vrot.lane.b32.xlu1 %v709_v34, %s1785_s29 }
 0x855   :  { %v649_v45 = vpop.permute.xlu1 %648 }
 0x856   :  { %v651_v47 = vmul.f32 %v649_v45, %v643_v46 }
 0x858   :  { %653 = vrot.lane.b32.xlu0 %v651_v47, %s1785_s29 }
 0x8aa   :  { %v712_v48 = vpop.permute.xlu1 %711 }
 0x8ab   :  { %v2108_v49 = vadd.f32 %v712_v48, %v704_v9 }
 0x8ad   :  { %1610 = vtanh.f32 %v2108_v49 }
 0x8b3   :  { %v1611_v50 = vpop.eup %1610 }
 0x8b4   :  { %717 = vrot.lane.b32.xlu0 %v1611_v50, %s1784_s26 }
 0x8ca   :  { %v654_v52 = vpop.permute.xlu0 %653 }
 0x8cb   :  { %v2113_v53 = vadd.f32 %v654_v52, %v646_v51 }
 0x8cd   :  { %1612 = vtanh.f32 %v2113_v53 }
 0x8d3   :  { %v1613_v54 = vpop.eup %1612 }
 0x8d4   :  { %659 = vrot.lane.b32.xlu2 %v1613_v54, %s1784_s26 }
 0x926   :  { %v718_v56 = vpop.permute.xlu0 %717 }
 0x927   :  { %v720_v38 = vmul.f32 %v718_v56, %v701_v33 }
 0x929   :  { %747 = vrot.lane.b32.xlu2 %v720_v38, %s1785_s29 }
 0x92e   :  { %v660_v57 = vpop.permute.xlu2 %659 }
 0x92f   :  { %v662_v58 = vmul.f32 %v660_v57, %v643_v46 }
 0x931   :  { %722 = vrot.lane.b32.xlu1 %v662_v58, %s1785_s29 }
 0x983   :  { %v748_v59 = vpop.permute.xlu2 %747 }
 0x984   :  { %1501 = vmatmul.msk.f32.vlgmr.msra.gmra.mxu3 %vm145_vm0, %v748_v59  ;;  %1503 = vmatmul.msk.f32.vlgmr.msrb.gmra.mxu1 %vm145_vm0, %v748_v59 }
 0x985   :  { %1055 = vmatpush.msra.mxu3 %v1953_v62  ;;  %1113 = vmatpush.msrb.mxu1 %v1875_v10  ;;  %v200_v10 = vadd.f32 %v1926_v28, %v2004_v14 }
 0x987   :  { %1056 = vmatpush.msra.mxu3 %v1959_v0  ;;  %1114 = vmatpush.msrb.mxu1 %v1880_v11 }
 0x989   :  { %1057 = vmatpush.msra.mxu3 %v1963_v2  ;;  %1115 = vmatpush.msrb.mxu1 %v1887_v12 }
 0x98b   :  { %1058 = vmatpush.msra.mxu3 %v1969_v4  ;;  %1116 = vmatpush.msrb.mxu1 %v1892_v13 }
 0x9a3   :  { %v723_v43 = vpop.permute.xlu1 %722 }
 0x9a4   :  { %1500 = vmatmul.msk.f32.vlgmr.msra.gmra.mxu2 %vm145_vm0, %v723_v43  ;;  %1525 = vmatmul.msk.f32.gmra.mxu0 %vm145_vm0, %v723_v43 }
 0x9a5   :  { %1030 = vmatpush.msra.mxu2 %v1951_v61 }
 0x9a7   :  { %1031 = vmatpush.msra.mxu2 %v1955_v63 }
 0x9a9   :  { %1032 = vmatpush.msra.mxu2 %v1961_v1 }
 0x9ab   :  { %1033 = vmatpush.msra.mxu2 %v1967_v3 }
 0xa01   :  { %v826_v11 = vpop.f32.mrf.mxu1 }
 0xa02   :  { %v829_v12 = vadd.f32 %v826_v11, %v200_v10 }
 0xa04   :  { %1614 = vtanh.f32 %v829_v12  ;;  %v1504_v19 = vmul.f32 -1.442695, %v829_v12 }
 0xa07   :  { %v768_v7 = vpop.f32.mrf.mxu3 }
 0xa0a   :  { %v1615_v13 = vpop.eup %1614 }
 0xa0b   :  { %852 = vrot.lane.b32.xlu1 %v1615_v13, %s1784_s26 }
 0xa21   :  { %v1429_v60 = vpop.f32.mrf.mxu0 }
 0xa22   :  { %v1430_v5 = vadd.f32 %v2055_v39, %v1429_v60 }
 0xa24   :  { %v1449_v6 = vmul.f32 2.0, %v1430_v5 }
 0xa26   :  { %1457 = vst.msk [vmem:[%s2296_s9 + $0x10] sm:$0xff] %vm145_vm0, %v1449_v6  ;;  %v1687_v6 = vld [vmem:[%s2289_s2 + $0x10] sm:$0xff] }
 0xa27   :  { %v743_v26 = vpop.f32.mrf.mxu2 }
 0xa28   :  { %v769_v8 = vadd.f32 %v768_v7, %v743_v26  ;;  %v1688_v7 = vld [vmem:[%s2289_s2 + $0x8] sm:$0xff] }
 0xa2a   :  { %v771_v14 = vadd.f32 %v2016_v23, %v769_v8 }
 0xa2c   :  { %1616 = vtanh.f32 %v771_v14  ;;  %v1502_v55 = vmul.f32 -1.442695, %v771_v14 }
 0xa2d   :  { %1618 = vpow2.f32 %v1504_v19 }
 0xa32   :  { %v1617_v16 = vpop.eup %1616 }
 0xa33   :  { %794 = vrot.lane.b32.xlu0 %v1617_v16, %s1784_s26  ;;  %v1619_v20 = vpop.eup %1618 }
 0xa34   :  { %v833_v22 = vadd.f32 1.0, %v1619_v20 }
 0xa36   :  { %1620 = vrcp.f32 %v833_v22  ;;  %v845_v32 = vand.u32 2147483648, %v833_v22  ;;  %vm839_vm8 = vweird.f32 %v833_v22  ;;  %v843_v33 = vand.u32 2147483647, %v833_v22 }
 0xa37   :  { %1622 = vpow2.f32 %v1502_v55 }
 0xa38   :  { %v846_v35 = vor.u32 1.1754944e-38, %v845_v32  ;;  %vm844_vm10 = vcmp.eq.f32.partialorder %v843_v33, 8.507059e+37 }
 0xa3c   :  { %v1621_v24 = vpop.eup %1620 }
 0xa3d   :  { %v835_v27 = vmul.f32 %v1621_v24, %v833_v22  ;;  %vm840_vm7 = vweird.f32 %v1621_v24  ;;  %v1623_v41 = vpop.eup %1622 }
 0xa3e   :  { %vm841_vm9 = vmor %vm839_vm8, %vm840_vm7  ;;  %v775_v42 = vadd.f32 1.0, %v1623_v41 }
 0xa3f   :  { %v836_v29 = vsub.f32 1.0, %v835_v27 }
 0xa40   :  { %1624 = vrcp.f32 %v775_v42  ;;  %v787_v47 = vand.u32 2147483648, %v775_v42  ;;  %vm781_vm12 = vweird.f32 %v775_v42  ;;  %v785_v9 = vand.u32 2147483647, %v775_v42 }
 0xa41   :  { %v837_v30 = vmul.f32 %v1621_v24, %v836_v29 }
 0xa42   :  { %v788_v50 = vor.u32 1.1754944e-38, %v787_v47  ;;  %vm786_vm14 = vcmp.eq.f32.partialorder %v785_v9, 8.507059e+37 }
 0xa43   :  { %v838_v31 = vadd.f32 %v1621_v24, %v837_v30 }
 0xa45   :  { %v842_v34 = vsel %vm841_vm9, %v1621_v24, %v838_v31 }
 0xa46   :  { %v847_v37 = vsel %vm844_vm10, %v846_v35, %v842_v34  ;;  %v1625_v25 = vpop.eup %1624 }
 0xa47   :  { %v777_v44 = vmul.f32 %v1625_v25, %v775_v42  ;;  %vm782_vm11 = vweird.f32 %v1625_v25  ;;  %v850_v56 = vmul.f32 %v847_v37, %v2108_v49 }
 0xa48   :  { %vm783_vm13 = vmor %vm781_vm12, %vm782_vm11 }
 0xa49   :  { %v778_v21 = vsub.f32 1.0, %v777_v44 }
 0xa4b   :  { %v779_v45 = vmul.f32 %v1625_v25, %v778_v21 }
 0xa4d   :  { %v780_v46 = vadd.f32 %v1625_v25, %v779_v45 }
 0xa4f   :  { %v784_v48 = vsel %vm783_vm13, %v1625_v25, %v780_v46 }
 0xa50   :  { %v789_v52 = vsel %vm786_vm14, %v788_v50, %v784_v48 }
 0xa51   :  { %v792_v59 = vmul.f32 %v789_v52, %v2113_v53  ;;  %v1686_v53 = vld [vmem:[%s2289_s2 + $0x18] sm:$0xff] }
 0xa7d   :  { %v853_v36 = vpop.permute.xlu1 %852 }
 0xa7e   :  { %v855_v40 = vmul.f32 %v853_v36, %v847_v37 }
 0xa80   :  { %857 = vrot.lane.b32.xlu0 %v855_v40, %s1785_s29 }
 0xaa5   :  { %v795_v51 = vpop.permute.xlu0 %794 }
 0xaa6   :  { %v797_v54 = vmul.f32 %v795_v51, %v789_v52 }
 0xaa8   :  { %799 = vrot.lane.b32.xlu2 %v797_v54, %s1785_s29 }
 0xaf2   :  { %v858_v38 = vpop.permute.xlu0 %857 }
 0xaf3   :  { %v2148_v57 = vadd.f32 %v858_v38, %v850_v56 }
 0xaf5   :  { %1626 = vtanh.f32 %v2148_v57 }
 0xafb   :  { %v1627_v58 = vpop.eup %1626 }
 0xafc   :  { %863 = vrot.lane.b32.xlu2 %v1627_v58, %s1784_s26 }
 0xb02   :  { %v800_v43 = vpop.permute.xlu2 %799 }
 0xb03   :  { %v2153_v10 = vadd.f32 %v800_v43, %v792_v59 }
 0xb05   :  { %1628 = vtanh.f32 %v2153_v10 }
 0xb0b   :  { %v1629_v11 = vpop.eup %1628 }
 0xb0c   :  { %805 = vrot.lane.b32.xlu1 %v1629_v11, %s1784_s26 }
 0xb56   :  { %v864_v12 = vpop.permute.xlu2 %863 }
 0xb57   :  { %v866_v49 = vmul.f32 %v864_v12, %v847_v37 }
 0xb59   :  { %893 = vrot.lane.b32.xlu1 %v866_v49, %s1785_s29 }
 0xb7e   :  { %v806_v13 = vpop.permute.xlu1 %805 }
 0xb7f   :  { %v808_v60 = vmul.f32 %v806_v13, %v789_v52 }
 0xb81   :  { %868 = vrot.lane.b32.xlu0 %v808_v60, %s1785_s29 }
 0xbcb   :  { %v894_v5 = vpop.permute.xlu1 %893 }
 0xbcc   :  { %1506 = vmatmul.msk.f32.vlgmr.msrb.gmra.mxu3 %vm145_vm0, %v894_v5  ;;  %1508 = vmatmul.msk.f32.vlgmr.msra.gmra.mxu1 %vm145_vm0, %v894_v5 }
 0xbcd   :  { %1201 = vmatpush.msrb.mxu3 %v1953_v62  ;;  %1259 = vmatpush.msra.mxu1 %v1686_v53  ;;  %v1689_v62 = vld [vmem:[%s2289_s2] sm:$0xff] }
 0xbcf   :  { %1202 = vmatpush.msrb.mxu3 %v1959_v0  ;;  %1260 = vmatpush.msra.mxu1 %v1687_v6  ;;  %v1691_v6 = vld [vmem:[#allocation2 + $0x10] sm:$0xff] }
 0xbd1   :  { %1203 = vmatpush.msrb.mxu3 %v1963_v2  ;;  %1261 = vmatpush.msra.mxu1 %v1688_v7  ;;  %v203_v2 = vadd.f32 %v1926_v28, %v2008_v17  ;;  %v1692_v7 = vld [vmem:[#allocation2 + $0x8] sm:$0xff] }
 0xbd3   :  { %1204 = vmatpush.msrb.mxu3 %v1969_v4  ;;  %1262 = vmatpush.msra.mxu1 %v1689_v62  ;;  %v1693_v62 = vld [vmem:[#allocation2] sm:$0xff] }
 0xbf3   :  { %v869_v0 = vpop.permute.xlu0 %868 }
 0xbf4   :  { %1505 = vmatmul.msk.f32.vlgmr.msrb.gmra.mxu2 %vm145_vm0, %v869_v0  ;;  %1526 = vmatmul.msk.f32.gmra.mxu0 %vm145_vm0, %v869_v0 }
 0xbf5   :  { %1176 = vmatpush.msrb.mxu2 %v1951_v61 }
 0xbf7   :  { %1177 = vmatpush.msrb.mxu2 %v1955_v63 }
 0xbf9   :  { %1178 = vmatpush.msrb.mxu2 %v1961_v1 }
 0xbfb   :  { %1179 = vmatpush.msrb.mxu2 %v1967_v3 }
 0xc49   :  { %v972_v4 = vpop.f32.mrf.mxu1 }
 0xc4a   :  { %v975_v26 = vadd.f32 %v972_v4, %v203_v2  ;;  %v1694_v2 = vld [vmem:[#allocation4 + $0x18] sm:$0xff]  ;;  %v1695_v4 = vld [vmem:[#allocation4 + $0x10] sm:$0xff] }
 0xc4c   :  { %1630 = vtanh.f32 %v975_v26  ;;  %v1509_v17 = vmul.f32 -1.442695, %v975_v26  ;;  %v1696_v26 = vld [vmem:[#allocation4 + $0x8] sm:$0xff] }
 0xc4f   :  { %v914_v61 = vpop.f32.mrf.mxu3 }
 0xc52   :  { %v1631_v8 = vpop.eup %1630 }
 0xc53   :  { %998 = vrot.lane.b32.xlu0 %v1631_v8, %s1784_s26  ;;  %v1697_v8 = vld [vmem:[#allocation4] sm:$0xff] }
 0xc71   :  { %v1432_v14 = vpop.f32.mrf.mxu0 }
 0xc72   :  { %v1433_v16 = vadd.f32 %v2055_v39, %v1432_v14  ;;  %v2214_v14 = vld [vmem:[%s2290_s3] ss:$0 sm:$0xff] }
 0xc74   :  { %v1450_v19 = vmul.f32 2.0, %v1433_v16  ;;  %v206_v16 = vadd.f32 %v2214_v14, %v2006_v15 }
 0xc76   :  { %1458 = vst.msk [vmem:[%s2296_s9 + $0x18] sm:$0xff] %vm145_vm0, %v1450_v19 }
 0xc77   :  { %v889_v63 = vpop.f32.mrf.mxu2 }
 0xc78   :  { %v915_v1 = vadd.f32 %v914_v61, %v889_v63 }
 0xc7a   :  { %v917_v28 = vadd.f32 %v2016_v23, %v915_v1 }
 0xc7c   :  { %1632 = vtanh.f32 %v917_v28  ;;  %v1507_v27 = vmul.f32 -1.442695, %v917_v28 }
 0xc7d   :  { %1634 = vpow2.f32 %v1509_v17 }
 0xc82   :  { %v1633_v3 = vpop.eup %1632 }
 0xc83   :  { %940 = vrot.lane.b32.xlu2 %v1633_v3, %s1784_s26  ;;  %v1635_v20 = vpop.eup %1634 }
 0xc84   :  { %v979_v22 = vadd.f32 1.0, %v1635_v20 }
 0xc86   :  { %1636 = vrcp.f32 %v979_v22  ;;  %v991_v34 = vand.u32 2147483648, %v979_v22  ;;  %vm985_vm1 = vweird.f32 %v979_v22  ;;  %v989_v35 = vand.u32 2147483647, %v979_v22 }
 0xc87   :  { %1638 = vpow2.f32 %v1507_v27 }
 0xc88   :  { %v992_v37 = vor.u32 1.1754944e-38, %v991_v34  ;;  %vm990_vm3 = vcmp.eq.f32.partialorder %v989_v35, 8.507059e+37 }
 0xc8c   :  { %v1637_v24 = vpop.eup %1636 }
 0xc8d   :  { %v981_v29 = vmul.f32 %v1637_v24, %v979_v22  ;;  %v1639_v31 = vpop.eup %1638  ;;  %vm986_vm15 = vweird.f32 %v1637_v24 }
 0xc8e   :  { %v921_v55 = vadd.f32 1.0, %v1639_v31  ;;  %vm987_vm2 = vmor %vm985_vm1, %vm986_vm15 }
 0xc8f   :  { %v982_v30 = vsub.f32 1.0, %v981_v29 }
 0xc90   :  { %1640 = vrcp.f32 %v921_v55  ;;  %v933_v47 = vand.u32 2147483648, %v921_v55  ;;  %vm927_vm5 = vweird.f32 %v921_v55  ;;  %v931_v9 = vand.u32 2147483647, %v921_v55 }
 0xc91   :  { %v983_v32 = vmul.f32 %v1637_v24, %v982_v30 }
 0xc92   :  { %v934_v50 = vor.u32 1.1754944e-38, %v933_v47  ;;  %vm932_vm7 = vcmp.eq.f32.partialorder %v931_v9, 8.507059e+37 }
 0xc93   :  { %v984_v33 = vadd.f32 %v1637_v24, %v983_v32 }
 0xc95   :  { %v988_v36 = vsel %vm987_vm2, %v1637_v24, %v984_v33 }
 0xc96   :  { %v993_v41 = vsel %vm990_vm3, %v992_v37, %v988_v36  ;;  %v1641_v25 = vpop.eup %1640 }
 0xc97   :  { %v923_v44 = vmul.f32 %v1641_v25, %v921_v55  ;;  %vm928_vm4 = vweird.f32 %v1641_v25  ;;  %v996_v56 = vmul.f32 %v993_v41, %v2148_v57 }
 0xc98   :  { %vm929_vm6 = vmor %vm927_vm5, %vm928_vm4 }
 0xc99   :  { %v924_v21 = vsub.f32 1.0, %v923_v44 }
 0xc9b   :  { %v925_v45 = vmul.f32 %v1641_v25, %v924_v21 }
 0xc9d   :  { %v926_v46 = vadd.f32 %v1641_v25, %v925_v45 }
 0xc9f   :  { %v930_v48 = vsel %vm929_vm6, %v1641_v25, %v926_v46 }
 0xca0   :  { %v935_v52 = vsel %vm932_vm7, %v934_v50, %v930_v48 }
 0xca1   :  { %v938_v43 = vmul.f32 %v935_v52, %v2153_v10  ;;  %v1690_v10 = vld [vmem:[#allocation2 + $0x18] sm:$0xff] }
 0xcc5   :  { %v999_v40 = vpop.permute.xlu0 %998 }
 0xcc6   :  { %v1001_v42 = vmul.f32 %v999_v40, %v993_v41 }
 0xcc8   :  { %1003 = vrot.lane.b32.xlu2 %v1001_v42, %s1785_s29 }
 0xcdd   :  { %v941_v51 = vpop.permute.xlu2 %940 }
 0xcde   :  { %v943_v54 = vmul.f32 %v941_v51, %v935_v52 }
 0xce0   :  { %945 = vrot.lane.b32.xlu1 %v943_v54, %s1785_s29 }
 0xd22   :  { %v1004_v38 = vpop.permute.xlu2 %1003 }
 0xd23   :  { %v2196_v58 = vadd.f32 %v1004_v38, %v996_v56 }
 0xd25   :  { %1642 = vtanh.f32 %v2196_v58 }
 0xd2b   :  { %v1643_v59 = vpop.eup %1642 }
 0xd2c   :  { %1009 = vrot.lane.b32.xlu1 %v1643_v59, %s1784_s26 }
 0xd52   :  { %v946_v11 = vpop.permute.xlu1 %945 }
 0xd53   :  { %v2201_v12 = vadd.f32 %v946_v11, %v938_v43 }
 0xd55   :  { %1644 = vtanh.f32 %v2201_v12 }
 0xd5b   :  { %v1645_v49 = vpop.eup %1644 }
 0xd5c   :  { %951 = vrot.lane.b32.xlu0 %v1645_v49, %s1784_s26 }
 0xd9e   :  { %v1010_v13 = vpop.permute.xlu1 %1009 }
 0xd9f   :  { %v1012_v57 = vmul.f32 %v1010_v13, %v993_v41 }
 0xda1   :  { %1039 = vrot.lane.b32.xlu0 %v1012_v57, %s1785_s29 }
 0xdce   :  { %v952_v60 = vpop.permute.xlu0 %951 }
 0xdcf   :  { %v954_v5 = vmul.f32 %v952_v60, %v935_v52 }
 0xdd1   :  { %1014 = vrot.lane.b32.xlu2 %v954_v5, %s1785_s29 }
 0xe13   :  { %v1040_v53 = vpop.permute.xlu0 %1039 }
 0xe14   :  { %1511 = vmatmul.msk.f32.vlgmr.msra.gmra.mxu3 %vm145_vm0, %v1040_v53  ;;  %1513 = vmatmul.msk.f32.vlgmr.msrb.gmra.mxu1 %vm145_vm0, %v1040_v53 }
 0xe15   :  { %1347 = vmatpush.msra.mxu3 %v1690_v10 }
 0xe17   :  { %1348 = vmatpush.msra.mxu3 %v1691_v6 }
 0xe19   :  { %1349 = vmatpush.msra.mxu3 %v1692_v7 }
 0xe1b   :  { %1350 = vmatpush.msra.mxu3 %v1693_v62 }
 0xe2b   :  { %v1015_v0 = vpop.permute.xlu2 %1014 }
 0xe2c   :  { %1510 = vmatmul.msk.f32.vlgmr.msra.gmra.mxu2 %vm145_vm0, %v1015_v0  ;;  %1527 = vmatmul.msk.f32.gmra.mxu0 %vm145_vm0, %v1015_v0  ;;  %v209_v0 = vadd.f32 %v2214_v14, %v2010_v18  ;;  %v2255_v18 = vld [vmem:[%s2293_s6] ss:$0 sm:$0xff] }
 0xe2d   :  { %1322 = vmatpush.msra.mxu2 %v1694_v2 }
 0xe2f   :  { %1323 = vmatpush.msra.mxu2 %v1695_v4 }
 0xe31   :  { %1324 = vmatpush.msra.mxu2 %v1696_v26 }
 0xe33   :  { %1325 = vmatpush.msra.mxu2 %v1697_v8 }
 0xe91   :  { %v1118_v19 = vpop.f32.mrf.mxu1 }
 0xe92   :  { %v1121_v61 = vadd.f32 %v1118_v19, %v206_v16 }
 0xe94   :  { %1646 = vtanh.f32 %v1121_v61  ;;  %v1514_v27 = vmul.f32 -1.442695, %v1121_v61 }
 0xe97   :  { %v1060_v17 = vpop.f32.mrf.mxu3 }
 0xe9a   :  { %v1647_v63 = vpop.eup %1646 }
 0xe9b   :  { %1144 = vrot.lane.b32.xlu2 %v1647_v63, %s1784_s26 }
 0xea9   :  { %v1435_v1 = vpop.f32.mrf.mxu0 }
 0xeaa   :  { %v1436_v28 = vadd.f32 %v2055_v39, %v1435_v1 }
 0xeac   :  { %v1451_v3 = vmul.f32 2.0, %v1436_v28 }
 0xeae   :  { %1459 = vst.msk [vmem:[%s2296_s9 + $0x20] sm:$0xff] %vm145_vm0, %v1451_v3 }
 0xeaf   :  { %v1035_v20 = vpop.f32.mrf.mxu2 }
 0xeb0   :  { %v1061_v22 = vadd.f32 %v1060_v17, %v1035_v20 }
 0xeb2   :  { %v1063_v15 = vadd.f32 %v2016_v23, %v1061_v22 }
 0xeb4   :  { %1648 = vtanh.f32 %v1063_v15  ;;  %v1512_v25 = vmul.f32 -1.442695, %v1063_v15 }
 0xeb5   :  { %1650 = vpow2.f32 %v1514_v27 }
 0xeba   :  { %v1649_v24 = vpop.eup %1648 }
 0xebb   :  { %1086 = vrot.lane.b32.xlu1 %v1649_v24, %s1784_s26  ;;  %v1651_v29 = vpop.eup %1650 }
 0xebc   :  { %v1125_v30 = vadd.f32 1.0, %v1651_v29 }
 0xebe   :  { %1652 = vrcp.f32 %v1125_v30  ;;  %v1137_v35 = vand.u32 2147483648, %v1125_v30  ;;  %vm1131_vm9 = vweird.f32 %v1125_v30  ;;  %v1135_v36 = vand.u32 2147483647, %v1125_v30 }
 0xebf   :  { %1654 = vpow2.f32 %v1512_v25 }
 0xec0   :  { %v1138_v37 = vor.u32 1.1754944e-38, %v1137_v35  ;;  %vm1136_vm11 = vcmp.eq.f32.partialorder %v1135_v36, 8.507059e+37 }
 0xec4   :  { %v1653_v31 = vpop.eup %1652 }
 0xec5   :  { %v1127_v32 = vmul.f32 %v1653_v31, %v1125_v30  ;;  %vm1132_vm8 = vweird.f32 %v1653_v31  ;;  %v1655_v44 = vpop.eup %1654 }
 0xec6   :  { %vm1133_vm10 = vmor %vm1131_vm9, %vm1132_vm8  ;;  %v1067_v21 = vadd.f32 1.0, %v1655_v44 }
 0xec7   :  { %v1128_v55 = vsub.f32 1.0, %v1127_v32 }
 0xec8   :  { %1656 = vrcp.f32 %v1067_v21  ;;  %v1079_v50 = vand.u32 2147483648, %v1067_v21  ;;  %vm1073_vm13 = vweird.f32 %v1067_v21  ;;  %v1077_v51 = vand.u32 2147483647, %v1067_v21 }
 0xec9   :  { %v1129_v33 = vmul.f32 %v1653_v31, %v1128_v55 }
 0xeca   :  { %v1080_v54 = vor.u32 1.1754944e-38, %v1079_v50  ;;  %vm1078_vm15 = vcmp.eq.f32.partialorder %v1077_v51, 8.507059e+37 }
 0xecb   :  { %v1130_v34 = vadd.f32 %v1653_v31, %v1129_v33 }
 0xecd   :  { %v1134_v23 = vsel %vm1133_vm10, %v1653_v31, %v1130_v34 }
 0xece   :  { %v1139_v41 = vsel %vm1136_vm11, %v1138_v37, %v1134_v23  ;;  %v1657_v45 = vpop.eup %1656 }
 0xecf   :  { %v1069_v46 = vmul.f32 %v1657_v45, %v1067_v21  ;;  %vm1074_vm12 = vweird.f32 %v1657_v45  ;;  %v1142_v43 = vmul.f32 %v1139_v41, %v2196_v58 }
 0xed0   :  { %vm1075_vm14 = vmor %vm1073_vm13, %vm1074_vm12 }
 0xed1   :  { %v1070_v47 = vsub.f32 1.0, %v1069_v46 }
 0xed3   :  { %v1071_v9 = vmul.f32 %v1657_v45, %v1070_v47 }
 0xed5   :  { %v1072_v48 = vadd.f32 %v1657_v45, %v1071_v9 }
 0xed7   :  { %v1076_v52 = vsel %vm1075_vm14, %v1657_v45, %v1072_v48 }
 0xed8   :  { %v1081_v38 = vsel %vm1078_vm15, %v1080_v54, %v1076_v52 }
 0xed9   :  { %v1084_v57 = vmul.f32 %v1081_v38, %v2201_v12 }
 0xef5   :  { %v1145_v40 = vpop.permute.xlu2 %1144 }
 0xef6   :  { %v1147_v42 = vmul.f32 %v1145_v40, %v1139_v41 }
 0xef8   :  { %1149 = vrot.lane.b32.xlu1 %v1147_v42, %s1785_s29 }
 0xf2d   :  { %v1087_v56 = vpop.permute.xlu1 %1086 }
 0xf2e   :  { %v1089_v59 = vmul.f32 %v1087_v56, %v1081_v38 }
 0xf30   :  { %1091 = vrot.lane.b32.xlu0 %v1089_v59, %s1785_s29 }
 0xf6a   :  { %v1150_v11 = vpop.permute.xlu1 %1149 }
 0xf6b   :  { %v2229_v49 = vadd.f32 %v1150_v11, %v1142_v43 }
 0xf6d   :  { %1658 = vtanh.f32 %v2229_v49 }
 0xf73   :  { %v1659_v13 = vpop.eup %1658 }
 0xf74   :  { %1155 = vrot.lane.b32.xlu0 %v1659_v13, %s1784_s26 }
 0xfa2   :  { %v1092_v60 = vpop.permute.xlu0 %1091 }
 0xfa3   :  { %v2234_v5 = vadd.f32 %v1092_v60, %v1084_v57 }
 0xfa5   :  { %1660 = vtanh.f32 %v2234_v5 }
 0xfab   :  { %v1661_v53 = vpop.eup %1660 }
 0xfac   :  { %1097 = vrot.lane.b32.xlu2 %v1661_v53, %s1784_s26 }
 0xfe6   :  { %v1156_v10 = vpop.permute.xlu0 %1155 }
 0xfe7   :  { %v1158_v58 = vmul.f32 %v1156_v10, %v1139_v41  ;;  %v1700_v10 = vld [vmem:[%s2295_s8] ss:$0 sm:$0xff] }
 0xfe9   :  { %1185 = vrot.lane.b32.xlu2 %v1158_v58, %s1785_s29 }
0x1006   :  { %v1098_v6 = vpop.permute.xlu2 %1097 }
0x1007   :  { %v1100_v7 = vmul.f32 %v1098_v6, %v1081_v38 }
0x1009   :  { %1160 = vrot.lane.b32.xlu1 %v1100_v7, %s1785_s29 }
0x1043   :  { %v1186_v62 = vpop.permute.xlu2 %1185 }
0x1044   :  { %1516 = vmatmul.msk.f32.vlgmr.msrb.gmra.mxu3 %vm145_vm0, %v1186_v62  ;;  %1518 = vmatmul.msk.f32.vlgmr.msra.gmra.mxu1 %vm145_vm0, %v1186_v62 }
0x107b   :  { %v1161_v12 = vpop.permute.xlu1 %1160 }
0x107c   :  { %1515 = vmatmul.msk.f32.vlgmr.msrb.gmra.mxu2 %vm145_vm0, %v1161_v12  ;;  %1528 = vmatmul.msk.f32.gmra.mxu0 %vm145_vm0, %v1161_v12 }
0x10c1   :  { %v1264_v2 = vpop.f32.mrf.mxu1 }
0x10c2   :  { %v1267_v4 = vadd.f32 %v1264_v2, %v209_v0 }
0x10c4   :  { %1662 = vtanh.f32 %v1267_v4 }
0x10c7   :  { %v1206_v61 = vpop.f32.mrf.mxu3 }
0x10ca   :  { %v1663_v26 = vpop.eup %1662 }
0x10cb   :  { %1290 = vrot.lane.b32.xlu1 %v1663_v26, %s1784_s26 }
0x10f9   :  { %v1438_v8 = vpop.f32.mrf.mxu0 }
0x10fa   :  { %v1439_v16 = vadd.f32 %v2055_v39, %v1438_v8  ;;  %v1519_v39 = vmul.f32 -1.442695, %v1267_v4 }
0x10fc   :  { %v1452_v19 = vmul.f32 2.0, %v1439_v16 }
0x10fe   :  { %1460 = vst.msk [vmem:[%s2296_s9 + $0x28] sm:$0xff] %vm145_vm0, %v1452_v19 }
0x10ff   :  { %v1181_v63 = vpop.f32.mrf.mxu2 }
0x1100   :  { %v1207_v1 = vadd.f32 %v1206_v61, %v1181_v63 }
0x1102   :  { %v1209_v14 = vadd.f32 %v2255_v18, %v1207_v1 }
0x1104   :  { %1664 = vtanh.f32 %v1209_v14  ;;  %v1517_v35 = vmul.f32 -1.442695, %v1209_v14 }
0x1105   :  { %1666 = vpow2.f32 %v1519_v39 }
0x110a   :  { %v1665_v28 = vpop.eup %1664 }
0x110b   :  { %1232 = vrot.lane.b32.xlu0 %v1665_v28, %s1784_s26  ;;  %v1667_v3 = vpop.eup %1666 }
0x110c   :  { %v1271_v17 = vadd.f32 1.0, %v1667_v3 }
0x110e   :  { %1668 = vrcp.f32 %v1271_v17  ;;  %v1283_v29 = vand.u32 2147483648, %v1271_v17  ;;  %vm1277_vm2 = vweird.f32 %v1271_v17  ;;  %v1281_v30 = vand.u32 2147483647, %v1271_v17 }
0x110f   :  { %1670 = vpow2.f32 %v1517_v35 }
0x1110   :  { %v1284_v32 = vor.u32 1.1754944e-38, %v1283_v29  ;;  %vm1282_vm4 = vcmp.eq.f32.partialorder %v1281_v30, 8.507059e+37 }
0x1114   :  { %v1669_v20 = vpop.eup %1668 }
0x1115   :  { %v1273_v22 = vmul.f32 %v1669_v20, %v1271_v17  ;;  %vm1278_vm1 = vweird.f32 %v1669_v20  ;;  %v1671_v36 = vpop.eup %1670 }
0x1116   :  { %vm1279_vm3 = vmor %vm1277_vm2, %vm1278_vm1  ;;  %v1213_v23 = vadd.f32 1.0, %v1671_v36 }
0x1117   :  { %v1274_v15 = vsub.f32 1.0, %v1273_v22 }
0x1118   :  { %1672 = vrcp.f32 %v1213_v23  ;;  %v1225_v44 = vand.u32 2147483648, %v1213_v23  ;;  %vm1219_vm6 = vweird.f32 %v1213_v23  ;;  %v1223_v21 = vand.u32 2147483647, %v1213_v23 }
0x1119   :  { %v1275_v24 = vmul.f32 %v1669_v20, %v1274_v15 }
0x111a   :  { %v1226_v46 = vor.u32 1.1754944e-38, %v1225_v44  ;;  %vm1224_vm8 = vcmp.eq.f32.partialorder %v1223_v21, 8.507059e+37 }
0x111b   :  { %v1276_v27 = vadd.f32 %v1669_v20, %v1275_v24 }
0x111d   :  { %v1280_v31 = vsel %vm1279_vm3, %v1669_v20, %v1276_v27 }
0x111e   :  { %v1285_v33 = vsel %vm1282_vm4, %v1284_v32, %v1280_v31  ;;  %v1673_v37 = vpop.eup %1672 }
0x111f   :  { %v1215_v40 = vmul.f32 %v1673_v37, %v1213_v23  ;;  %vm1220_vm5 = vweird.f32 %v1673_v37  ;;  %v1288_v50 = vmul.f32 %v1285_v33, %v2229_v49 }
0x1120   :  { %vm1221_vm7 = vmor %vm1219_vm6, %vm1220_vm5 }
0x1121   :  { %v1216_v41 = vsub.f32 1.0, %v1215_v40 }
0x1123   :  { %v1217_v42 = vmul.f32 %v1673_v37, %v1216_v41 }
0x1125   :  { %v1218_v25 = vadd.f32 %v1673_v37, %v1217_v42 }
0x1127   :  { %v1222_v45 = vsel %vm1221_vm7, %v1673_v37, %v1218_v25 }
0x1128   :  { %v1227_v9 = vsel %vm1224_vm8, %v1226_v46, %v1222_v45 }
0x1129   :  { %v1230_v56 = vmul.f32 %v1227_v9, %v2234_v5 }
0x113d   :  { %v1291_v55 = vpop.permute.xlu1 %1290 }
0x113e   :  { %v1293_v34 = vmul.f32 %v1291_v55, %v1285_v33 }
0x1140   :  { %1295 = vrot.lane.b32.xlu0 %v1293_v34, %s1785_s29 }
0x117d   :  { %v1233_v47 = vpop.permute.xlu0 %1232 }
0x117e   :  { %v1235_v48 = vmul.f32 %v1233_v47, %v1227_v9 }
0x1180   :  { %1237 = vrot.lane.b32.xlu2 %v1235_v48, %s1785_s29 }
0x11b2   :  { %v1296_v51 = vpop.permute.xlu0 %1295 }
0x11b3   :  { %v1298_v52 = vadd.f32 %v1296_v51, %v1288_v50 }
0x11b5   :  { %1674 = vtanh.f32 %v1298_v52 }
0x11bb   :  { %v1675_v54 = vpop.eup %1674 }
0x11bc   :  { %1301 = vrot.lane.b32.xlu2 %v1675_v54, %s1784_s26 }
0x11da   :  { %v1238_v38 = vpop.permute.xlu2 %1237 }
0x11db   :  { %v1240_v59 = vadd.f32 %v1238_v38, %v1230_v56 }
0x11dd   :  { %1676 = vtanh.f32 %v1240_v59 }
0x11e3   :  { %v1677_v43 = vpop.eup %1676 }
0x11e4   :  { %1243 = vrot.lane.b32.xlu1 %v1677_v43, %s1784_s26 }
0x1216   :  { %v1302_v11 = vpop.permute.xlu2 %1301 }
0x1217   :  { %v1304_v13 = vmul.f32 %v1302_v11, %v1285_v33 }
0x1219   :  { %1331 = vrot.lane.b32.xlu1 %v1304_v13, %s1785_s29 }
0x1256   :  { %v1244_v57 = vpop.permute.xlu1 %1243 }
0x1257   :  { %v1246_v49 = vmul.f32 %v1244_v57, %v1227_v9 }
0x1259   :  { %1306 = vrot.lane.b32.xlu0 %v1246_v49, %s1785_s29 }
0x128b   :  { %v1332_v60 = vpop.permute.xlu1 %1331 }
0x128c   :  { %1521 = vmatmul.msk.f32.vlgmr.msra.gmra.mxu3 %vm145_vm0, %v1332_v60 }
0x12cb   :  { %v1307_v53 = vpop.permute.xlu0 %1306 }
0x12cc   :  { %1520 = vmatmul.msk.f32.vlgmr.msra.gmra.mxu2 %vm145_vm0, %v1307_v53  ;;  %1529 = vmatmul.msk.f32.gmra.mxu0 %vm145_vm0, %v1307_v53 }
0x130f   :  { %v1352_v7 = vpop.f32.mrf.mxu3 }
0x1349   :  { %v1441_v5 = vpop.f32.mrf.mxu0 }
0x134a   :  { %v1442_v58 = vadd.f32 %v1700_v10, %v1441_v5 }
0x134c   :  { %v1453_v6 = vmul.f32 2.0, %v1442_v58 }
0x134e   :  { %1461 = vst.msk [vmem:[%s2296_s9 + $0x30] sm:$0xff] %vm145_vm0, %v1453_v6 }
0x134f   :  { %v1327_v62 = vpop.f32.mrf.mxu2 }
0x1350   :  { %v1353_v12 = vadd.f32 %v1352_v7, %v1327_v62 }
0x1352   :  { %v1355_v0 = vadd.f32 %v2255_v18, %v1353_v12 }
0x1354   :  { %1678 = vtanh.f32 %v1355_v0  ;;  %v1522_v4 = vmul.f32 -1.442695, %v1355_v0 }
0x1356   :  { %1680 = vpow2.f32 %v1522_v4 }
0x135a   :  { %v1679_v2 = vpop.eup %1678 }
0x135b   :  { %1378 = vrot.lane.b32.xlu2 %v1679_v2, %s1784_s26 }
0x135c   :  { %v1681_v26 = vpop.eup %1680 }
0x135d   :  { %v1359_v8 = vadd.f32 1.0, %v1681_v26 }
0x135f   :  { %1682 = vrcp.f32 %v1359_v8  ;;  %v1371_v14 = vand.u32 2147483648, %v1359_v8  ;;  %vm1365_vm10 = vweird.f32 %v1359_v8  ;;  %v1369_v28 = vand.u32 2147483647, %v1359_v8 }
0x1361   :  { %v1372_v39 = vor.u32 1.1754944e-38, %v1371_v14  ;;  %vm1370_vm12 = vcmp.eq.f32.partialorder %v1369_v28, 8.507059e+37 }
0x1365   :  { %v1683_v16 = vpop.eup %1682 }
0x1366   :  { %v1361_v19 = vmul.f32 %v1683_v16, %v1359_v8  ;;  %vm1366_vm9 = vweird.f32 %v1683_v16 }
0x1367   :  { %vm1367_vm11 = vmor %vm1365_vm10, %vm1366_vm9 }
0x1368   :  { %v1362_v61 = vsub.f32 1.0, %v1361_v19 }
0x136a   :  { %v1363_v63 = vmul.f32 %v1683_v16, %v1362_v61 }
0x136c   :  { %v1364_v1 = vadd.f32 %v1683_v16, %v1363_v63 }
0x136e   :  { %v1368_v18 = vsel %vm1367_vm11, %v1683_v16, %v1364_v1 }
0x136f   :  { %v1373_v17 = vsel %vm1370_vm12, %v1372_v39, %v1368_v18 }
0x1370   :  { %v1376_v22 = vmul.f32 %v1373_v17, %v1240_v59 }
0x13b5   :  { %v1379_v3 = vpop.permute.xlu2 %1378 }
0x13b6   :  { %v1381_v20 = vmul.f32 %v1379_v3, %v1373_v17 }
0x13b8   :  { %1383 = vrot.lane.b32.xlu0 %v1381_v20, %s1785_s29 }
0x142a   :  { %v1384_v15 = vpop.permute.xlu0 %1383 }
0x142b   :  { %v1386_v24 = vadd.f32 %v1384_v15, %v1376_v22 }
0x142d   :  { %1684 = vtanh.f32 %v1386_v24 }
0x1433   :  { %v1685_v27 = vpop.eup %1684 }
0x1434   :  { %1389 = vrot.lane.b32.xlu1 %v1685_v27, %s1784_s26 }
0x14a6   :  { %v1390_v29 = vpop.permute.xlu1 %1389 }
0x14a7   :  { %v1392_v30 = vmul.f32 %v1390_v29, %v1373_v17 }
0x14a9   :  { %1402 = vrot.lane.b32.xlu2 %v1392_v30, %s1785_s29 }
0x1503   :  { %v1403_v31 = vpop.permute.xlu2 %1402 }
0x1504   :  { %1530 = vmatmul.msk.f32.gmra.mxu0 %vm145_vm0, %v1403_v31 }
0x1581   :  { %v1444_v32 = vpop.f32.mrf.mxu0 }
0x1582   :  { %v1445_v55 = vadd.f32 %v1700_v10, %v1444_v32 }
0x1584   :  { %v1454_v33 = vmul.f32 2.0, %v1445_v55 }
0x1586   :  { %1462 = vst.msk [vmem:[%s2296_s9 + $0x38] sm:$0xff] %vm145_vm0, %v1454_v33 }
0x1587   :  { %1467 = vsyncpa [#allocation3], 1 }
0x1588   :  { %1468 = vsyncpa [#allocation5], 1 }

</bundles_post_ra>
